<compile_context>
chip_gen: v7x
topology: tpu7x:2x2x1
jax: 0.10.0
libtpu: 0.0.40
codegen_flags: <defaults>
</compile_context>

<pallas_src>
import functools

import jax
import jax.numpy as jnp
from jax.experimental import pallas as pl
from jax.experimental.pallas import tpu as pltpu

INPUT_DIM = 512
LATENT_DIM = 128
H1 = 256
H2 = 128


def vae_kernel(x_ref, eps_ref,
               w1, b1, w2, b2,
               wh, bh,                      # fused [mu | logvar] head: [128, 256], [1, 256]
               wd1, bd1, wd2, bd2, wd3, bd3,
               recon_ref, mu_ref, logvar_ref):
    dt = w1.dtype                           # matmul operand dtype (bf16 or f32)
    x = x_ref[...].astype(dt)

    # ---- encoder: 512 -> 256 -> 128, ReLU (accumulate in f32, ReLU in f32) ----
    h = jnp.dot(x, w1[...], preferred_element_type=jnp.float32) + b1[...]
    h = jnp.maximum(h, 0.0).astype(dt)
    h = jnp.dot(h, w2[...], preferred_element_type=jnp.float32) + b2[...]
    h = jnp.maximum(h, 0.0).astype(dt)

    # ---- fused mu/logvar heads: one 128 -> 256 matmul, slice at lane boundary ----
    ml = jnp.dot(h, wh[...], preferred_element_type=jnp.float32) + bh[...]
    mu = ml[:, :LATENT_DIM]
    logvar = ml[:, LATENT_DIM:]

    # ---- reparameterize (f32 elementwise): z = mu + eps * exp(0.5 * logvar) ----
    std = jnp.exp(0.5 * logvar)
    eps = eps_ref[...].astype(jnp.float32)
    z = (mu + eps * std).astype(dt)

    # ---- decoder: 128 -> 128 -> 256 -> 512, ReLU/ReLU/Sigmoid ----
    d = jnp.dot(z, wd1[...], preferred_element_type=jnp.float32) + bd1[...]
    d = jnp.maximum(d, 0.0).astype(dt)
    d = jnp.dot(d, wd2[...], preferred_element_type=jnp.float32) + bd2[...]
    d = jnp.maximum(d, 0.0).astype(dt)
    d = jnp.dot(d, wd3[...], preferred_element_type=jnp.float32) + bd3[...]
    recon = jax.nn.sigmoid(d)

    recon_ref[...] = recon.astype(recon_ref.dtype)
    mu_ref[...] = mu
    logvar_ref[...] = logvar


def _round_up(n, m):
    return ((n + m - 1) // m) * m


def _pick_tile(batch, tm):
    """Batch tile: one tile when the (8-padded) batch fits in tm, else tm-row tiles.

    No forced multi-step split: on v5e/v6e the grid is a serial loop, so splitting
    a batch that fits in one tile is pure overhead.  When the grid does have >1
    step (batch > tm, tm>=256 by default) each per-TC tile stays MXU-filling, so
    v7x megacore sharding (dimension_semantics="parallel") still gets its win.
    """
    bp8 = _round_up(batch, 8)
    return min(_round_up(tm, 8), bp8)


def prepack_params(params, matmul_dtype=jnp.bfloat16):
    """One-time packing: fuse the mu/logvar heads and cast weights to the matmul dtype.

    Done outside the per-call forward path so the concat / casts do not re-read
    the weights from HBM on every call.
    """
    (w1, b1), (w2, b2), (wmu, bmu), (wlv, blv), (wd1, bd1), (wd2, bd2), (wd3, bd3) = params
    wh = jnp.concatenate([wmu, wlv], axis=1)   # [128, 256]
    bh = jnp.concatenate([bmu, blv], axis=1)   # [1, 256]
    weights = tuple(w.astype(matmul_dtype) for w in (w1, w2, wh, wd1, wd2, wd3))
    biases = tuple(b.astype(jnp.float32) for b in (b1, b2, bh, bd1, bd2, bd3))
    return weights, biases


@functools.partial(jax.jit, static_argnames=("tm",))
def vae_forward(x, eps, packed, *, tm=512):
    """x: [B, 512], eps: [B, 128] (standard normal), any float dtype (f32/bf16).

    Returns (recon, mu, logvar).  recon is in the matmul dtype of the packed
    weights (bf16 in the fast path); mu / logvar are float32.
    """
    weights, biases = packed
    B = x.shape[0]
    recon_dtype = weights[0].dtype   # bf16 fast path, f32 reference path

    # Tile selection + padding so any batch size works with an MXU-friendly tile.
    tm_eff = _pick_tile(B, tm)
    Bp = _round_up(B, tm_eff)
    if Bp != B:
        x = jnp.pad(x, ((0, Bp - B), (0, 0)))
        eps = jnp.pad(eps, ((0, Bp - B), (0, 0)))

    def act_spec(feat):
        return pl.BlockSpec((tm_eff, feat), lambda i: (i, 0))

    def full_spec(shape):
        # Constant index_map: the small (~0.75 MiB bf16) weights stay VMEM-resident
        # across grid steps and are not re-DMA'd.
        return pl.BlockSpec(shape, lambda i: (0, 0))

    in_specs = [act_spec(INPUT_DIM), act_spec(LATENT_DIM)]
    args = [x, eps]
    for w, b in zip(weights, biases):
        in_specs += [full_spec(w.shape), full_spec(b.shape)]
        args += [w, b]

    out_shape = (
        jax.ShapeDtypeStruct((Bp, INPUT_DIM), recon_dtype),
        jax.ShapeDtypeStruct((Bp, LATENT_DIM), jnp.float32),
        jax.ShapeDtypeStruct((Bp, LATENT_DIM), jnp.float32),
    )
    out_specs = [act_spec(INPUT_DIM), act_spec(LATENT_DIM), act_spec(LATENT_DIM)]

    recon, mu, logvar = pl.pallas_call(
        vae_kernel,
        out_shape=out_shape,
        grid_spec=pltpu.PrefetchScalarGridSpec(
            num_scalar_prefetch=0,
            grid=(Bp // tm_eff,),
            in_specs=in_specs,
            out_specs=out_specs,
        ),
        compiler_params=pltpu.CompilerParams(
            dimension_semantics=("parallel",),
            # Explicit scoped-VMEM limit so large batch tiles (tm up to ~1024)
            # compile on all generations; 48 MiB is safely below v7x's 64 MiB
            # physical and well below v5e/v6e's 128 MiB.
            vmem_limit_bytes=48 * 1024 * 1024,
        ),
    )(*args)

    if Bp != B:
        recon, mu, logvar = recon[:B], mu[:B], logvar[:B]
    return recon, mu, logvar


def init_linear(key, fan_in, fan_out):
    """Deterministic init mimicking PyTorch nn.Linear default (uniform +/- 1/sqrt(fan_in)).
    Weight returned as [fan_in, fan_out], bias as [1, fan_out]."""
    kw, kb = jax.random.split(key)
    bound = 1.0 / jnp.sqrt(fan_in)
    w = jax.random.uniform(kw, (fan_in, fan_out), jnp.float32, -bound, bound)
    b = jax.random.uniform(kb, (1, fan_out), jnp.float32, -bound, bound)
    return w, b


def make_params(key):
    dims = [
        (INPUT_DIM, H1),     # encoder[0]
        (H1, H2),            # encoder[2]
        (H2, LATENT_DIM),    # mu_layer
        (H2, LATENT_DIM),    # logvar_layer
        (LATENT_DIM, H2),    # decoder[0]
        (H2, H1),            # decoder[2]
        (H1, INPUT_DIM),     # decoder[4]
    ]
    keys = jax.random.split(key, len(dims))
    return [init_linear(k, fi, fo) for k, (fi, fo) in zip(keys, dims)]


def vae_reference(x, eps, params):
    (w1, b1), (w2, b2), (wmu, bmu), (wlv, blv), (wd1, bd1), (wd2, bd2), (wd3, bd3) = params
    h = jnp.maximum(x @ w1 + b1, 0.0)
    h = jnp.maximum(h @ w2 + b2, 0.0)
    mu = h @ wmu + bmu
    logvar = h @ wlv + blv
    z = mu + eps * jnp.exp(0.5 * logvar)
    d = jnp.maximum(z @ wd1 + bd1, 0.0)
    d = jnp.maximum(d @ wd2 + bd2, 0.0)
    recon = jax.nn.sigmoid(d @ wd3 + bd3)
    return recon, mu, logvar


if __name__ == "__main__":
    key = jax.random.PRNGKey(0)
    k_param, k_x, k_eps = jax.random.split(key, 3)

    B = 8
    params = make_params(k_param)
    x = jax.random.normal(k_x, (B, INPUT_DIM), jnp.float32)
    # eps drawn host-side (deterministic) — replaces torch.randn_like inside forward
    # TODO(synk): in-kernel eps via pltpu.prng_random_bits would drop ~10% of HBM
    # traffic but breaks host-side determinism needed for this reference check.
    eps = jax.random.normal(k_eps, (B, LATENT_DIM), jnp.float32)

    r_ref, m_ref, l_ref = vae_reference(x, eps, params)

    # ---- f32 matmul path: tight check (wiring / fused-head correctness) ----
    packed_f32 = prepack_params(params, jnp.float32)
    recon, mu, logvar = vae_forward(x, eps, packed_f32)
    jax.block_until_ready((recon, mu, logvar))
    assert recon.dtype == jnp.float32
    assert jnp.allclose(recon, r_ref, atol=1e-4, rtol=1e-4)
    assert jnp.allclose(mu, m_ref, atol=1e-4, rtol=1e-4)
    assert jnp.allclose(logvar, l_ref, atol=1e-4, rtol=1e-4)

    # ---- bf16 path (default, fast): bf16 activation I/O + bf16 recon output ----
    packed_bf16 = prepack_params(params, jnp.bfloat16)
    xb = x.astype(jnp.bfloat16)
    epsb = eps.astype(jnp.bfloat16)
    recon, mu, logvar = vae_forward(xb, epsb, packed_bf16)
    jax.block_until_ready((recon, mu, logvar))
    assert recon.dtype == jnp.bfloat16
    assert mu.dtype == jnp.float32 and logvar.dtype == jnp.float32
    assert jnp.allclose(recon.astype(jnp.float32), r_ref, atol=1e-1, rtol=1e-1)
    assert jnp.allclose(mu, m_ref, atol=1e-1, rtol=1e-1)
    assert jnp.allclose(logvar, l_ref, atol=1e-1, rtol=1e-1)

    # ---- Ragged batch + multi-step grid (small tm to exercise the tiled path) ----
    B2 = 20
    x2 = jax.random.normal(k_x, (B2, INPUT_DIM), jnp.float32)
    eps2 = jax.random.normal(k_eps, (B2, LATENT_DIM), jnp.float32)
    r2, m2, l2 = vae_forward(x2.astype(jnp.bfloat16), eps2.astype(jnp.bfloat16),
                             packed_bf16, tm=8)
    jax.block_until_ready((r2, m2, l2))
    r2_ref, m2_ref, l2_ref = vae_reference(x2, eps2, params)
    assert r2.shape == (B2, INPUT_DIM) and m2.shape == (B2, LATENT_DIM)
    assert jnp.allclose(r2.astype(jnp.float32), r2_ref, atol=1e-1, rtol=1e-1)
    assert jnp.allclose(m2, m2_ref, atol=1e-1, rtol=1e-1)
    assert jnp.allclose(l2, l2_ref, atol=1e-1, rtol=1e-1)

    print("KERNEL_OK")
</pallas_src>

<mosaic_0001>
module attributes {stable_mosaic.version = 11 : i64} {
  func.func @vae_kernel(%arg0: i32, %arg1: memref<8x512xf32, #tpu.memory_space<vmem>>, %arg2: memref<8x128xf32, #tpu.memory_space<vmem>>, %arg3: memref<512x256xf32, #tpu.memory_space<vmem>>, %arg4: memref<1x256xf32, #tpu.memory_space<vmem>>, %arg5: memref<256x128xf32, #tpu.memory_space<vmem>>, %arg6: memref<1x128xf32, #tpu.memory_space<vmem>>, %arg7: memref<128x256xf32, #tpu.memory_space<vmem>>, %arg8: memref<1x256xf32, #tpu.memory_space<vmem>>, %arg9: memref<128x128xf32, #tpu.memory_space<vmem>>, %arg10: memref<1x128xf32, #tpu.memory_space<vmem>>, %arg11: memref<128x256xf32, #tpu.memory_space<vmem>>, %arg12: memref<1x256xf32, #tpu.memory_space<vmem>>, %arg13: memref<256x512xf32, #tpu.memory_space<vmem>>, %arg14: memref<1x512xf32, #tpu.memory_space<vmem>>, %arg15: memref<8x512xf32, #tpu.memory_space<vmem>>, %arg16: memref<8x128xf32, #tpu.memory_space<vmem>>, %arg17: memref<8x128xf32, #tpu.memory_space<vmem>>) attributes {dimension_semantics = [#tpu.dimension_semantics<parallel>], iteration_bounds = array<i64: 1>, scalar_prefetch = 0 : i64, scratch_operands = 0 : i64, tpu.core_type = #tpu.core_type<tc>, window_params = [{transform_indices = @transform_0, window_bounds = array<i64: 8, 512>}, {transform_indices = @transform_1, window_bounds = array<i64: 8, 128>}, {pipeline_mode = #tpu.pipeline_mode<synchronous>, transform_indices = @transform_2, window_bounds = array<i64: 512, 256>}, {pipeline_mode = #tpu.pipeline_mode<synchronous>, transform_indices = @transform_3, window_bounds = array<i64: 1, 256>}, {pipeline_mode = #tpu.pipeline_mode<synchronous>, transform_indices = @transform_4, window_bounds = array<i64: 256, 128>}, {pipeline_mode = #tpu.pipeline_mode<synchronous>, transform_indices = @transform_5, window_bounds = array<i64: 1, 128>}, {pipeline_mode = #tpu.pipeline_mode<synchronous>, transform_indices = @transform_6, window_bounds = array<i64: 128, 256>}, {pipeline_mode = #tpu.pipeline_mode<synchronous>, transform_indices = @transform_7, window_bounds = array<i64: 1, 256>}, {pipeline_mode = #tpu.pipeline_mode<synchronous>, transform_indices = @transform_8, window_bounds = array<i64: 128, 128>}, {pipeline_mode = #tpu.pipeline_mode<synchronous>, transform_indices = @transform_9, window_bounds = array<i64: 1, 128>}, {pipeline_mode = #tpu.pipeline_mode<synchronous>, transform_indices = @transform_10, window_bounds = array<i64: 128, 256>}, {pipeline_mode = #tpu.pipeline_mode<synchronous>, transform_indices = @transform_11, window_bounds = array<i64: 1, 256>}, {pipeline_mode = #tpu.pipeline_mode<synchronous>, transform_indices = @transform_12, window_bounds = array<i64: 256, 512>}, {pipeline_mode = #tpu.pipeline_mode<synchronous>, transform_indices = @transform_13, window_bounds = array<i64: 1, 512>}, {transform_indices = @transform_14, window_bounds = array<i64: 8, 512>}, {transform_indices = @transform_15, window_bounds = array<i64: 8, 128>}, {transform_indices = @transform_16, window_bounds = array<i64: 8, 128>}]} {
    %c0 = arith.constant 0 : index
    %c0_0 = arith.constant 0 : index
    %0 = vector.load %arg1[%c0, %c0_0] : memref<8x512xf32, #tpu.memory_space<vmem>>, vector<8x512xf32>
    %c0_1 = arith.constant 0 : index
    %c0_2 = arith.constant 0 : index
    %1 = vector.load %arg3[%c0_1, %c0_2] : memref<512x256xf32, #tpu.memory_space<vmem>>, vector<512x256xf32>
    %cst = arith.constant dense<0.000000e+00> : vector<8x256xf32>
    %2 = tpu.matmul %0, %1, %cst {dimension_numbers = #tpu.dot_dimension_numbers<[1], [0], [0], [1], [0, 0, 1, 1], [], []>} : vector<8x512xf32>, vector<512x256xf32>, vector<8x256xf32> -> vector<8x256xf32>
    %c0_3 = arith.constant 0 : index
    %c0_4 = arith.constant 0 : index
    %3 = vector.load %arg4[%c0_3, %c0_4] : memref<1x256xf32, #tpu.memory_space<vmem>>, vector<1x256xf32>
    %4 = vector.broadcast %3 : vector<1x256xf32> to vector<8x256xf32>
    %5 = arith.addf %2, %4 : vector<8x256xf32>
    %cst_5 = arith.constant 0.000000e+00 : f32
    %6 = vector.broadcast %cst_5 : f32 to vector<8x256xf32>
    %7 = arith.maximumf %5, %6 : vector<8x256xf32>
    %c0_6 = arith.constant 0 : index
    %c0_7 = arith.constant 0 : index
    %8 = vector.load %arg5[%c0_6, %c0_7] : memref<256x128xf32, #tpu.memory_space<vmem>>, vector<256x128xf32>
    %cst_8 = arith.constant dense<0.000000e+00> : vector<8x128xf32>
    %9 = tpu.matmul %7, %8, %cst_8 {dimension_numbers = #tpu.dot_dimension_numbers<[1], [0], [0], [1], [0, 0, 1, 1], [], []>} : vector<8x256xf32>, vector<256x128xf32>, vector<8x128xf32> -> vector<8x128xf32>
    %c0_9 = arith.constant 0 : index
    %c0_10 = arith.constant 0 : index
    %10 = vector.load %arg6[%c0_9, %c0_10] : memref<1x128xf32, #tpu.memory_space<vmem>>, vector<1x128xf32>
    %11 = vector.broadcast %10 : vector<1x128xf32> to vector<8x128xf32>
    %12 = arith.addf %9, %11 : vector<8x128xf32>
    %cst_11 = arith.constant 0.000000e+00 : f32
    %13 = vector.broadcast %cst_11 : f32 to vector<8x128xf32>
    %14 = arith.maximumf %12, %13 : vector<8x128xf32>
    %c0_12 = arith.constant 0 : index
    %c0_13 = arith.constant 0 : index
    %15 = vector.load %arg7[%c0_12, %c0_13] : memref<128x256xf32, #tpu.memory_space<vmem>>, vector<128x256xf32>
    %cst_14 = arith.constant dense<0.000000e+00> : vector<8x256xf32>
    %16 = tpu.matmul %14, %15, %cst_14 {dimension_numbers = #tpu.dot_dimension_numbers<[1], [0], [0], [1], [0, 0, 1, 1], [], []>} : vector<8x128xf32>, vector<128x256xf32>, vector<8x256xf32> -> vector<8x256xf32>
    %c0_15 = arith.constant 0 : index
    %c0_16 = arith.constant 0 : index
    %17 = vector.load %arg8[%c0_15, %c0_16] : memref<1x256xf32, #tpu.memory_space<vmem>>, vector<1x256xf32>
    %18 = vector.broadcast %17 : vector<1x256xf32> to vector<8x256xf32>
    %19 = arith.addf %16, %18 : vector<8x256xf32>
    %20 = vector.extract_strided_slice %19 {offsets = [0, 0], sizes = [8, 128], strides = [1, 1]} : vector<8x256xf32> to vector<8x128xf32>
    %21 = vector.extract_strided_slice %19 {offsets = [0, 128], sizes = [8, 128], strides = [1, 1]} : vector<8x256xf32> to vector<8x128xf32>
    %cst_17 = arith.constant 5.000000e-01 : f32
    %22 = vector.broadcast %cst_17 : f32 to vector<8x128xf32>
    %23 = arith.mulf %22, %21 : vector<8x128xf32>
    %24 = math.exp %23 : vector<8x128xf32>
    %c0_18 = arith.constant 0 : index
    %c0_19 = arith.constant 0 : index
    %25 = vector.load %arg2[%c0_18, %c0_19] : memref<8x128xf32, #tpu.memory_space<vmem>>, vector<8x128xf32>
    %26 = arith.mulf %25, %24 : vector<8x128xf32>
    %27 = arith.addf %20, %26 : vector<8x128xf32>
    %c0_20 = arith.constant 0 : index
    %c0_21 = arith.constant 0 : index
    %28 = vector.load %arg9[%c0_20, %c0_21] : memref<128x128xf32, #tpu.memory_space<vmem>>, vector<128x128xf32>
    %cst_22 = arith.constant dense<0.000000e+00> : vector<8x128xf32>
    %29 = tpu.matmul %27, %28, %cst_22 {dimension_numbers = #tpu.dot_dimension_numbers<[1], [0], [0], [1], [0, 0, 1, 1], [], []>} : vector<8x128xf32>, vector<128x128xf32>, vector<8x128xf32> -> vector<8x128xf32>
    %c0_23 = arith.constant 0 : index
    %c0_24 = arith.constant 0 : index
    %30 = vector.load %arg10[%c0_23, %c0_24] : memref<1x128xf32, #tpu.memory_space<vmem>>, vector<1x128xf32>
    %31 = vector.broadcast %30 : vector<1x128xf32> to vector<8x128xf32>
    %32 = arith.addf %29, %31 : vector<8x128xf32>
    %cst_25 = arith.constant 0.000000e+00 : f32
    %33 = vector.broadcast %cst_25 : f32 to vector<8x128xf32>
    %34 = arith.maximumf %32, %33 : vector<8x128xf32>
    %c0_26 = arith.constant 0 : index
    %c0_27 = arith.constant 0 : index
    %35 = vector.load %arg11[%c0_26, %c0_27] : memref<128x256xf32, #tpu.memory_space<vmem>>, vector<128x256xf32>
    %cst_28 = arith.constant dense<0.000000e+00> : vector<8x256xf32>
    %36 = tpu.matmul %34, %35, %cst_28 {dimension_numbers = #tpu.dot_dimension_numbers<[1], [0], [0], [1], [0, 0, 1, 1], [], []>} : vector<8x128xf32>, vector<128x256xf32>, vector<8x256xf32> -> vector<8x256xf32>
    %c0_29 = arith.constant 0 : index
    %c0_30 = arith.constant 0 : index
    %37 = vector.load %arg12[%c0_29, %c0_30] : memref<1x256xf32, #tpu.memory_space<vmem>>, vector<1x256xf32>
    %38 = vector.broadcast %37 : vector<1x256xf32> to vector<8x256xf32>
    %39 = arith.addf %36, %38 : vector<8x256xf32>
    %cst_31 = arith.constant 0.000000e+00 : f32
    %40 = vector.broadcast %cst_31 : f32 to vector<8x256xf32>
    %41 = arith.maximumf %39, %40 : vector<8x256xf32>
    %c0_32 = arith.constant 0 : index
    %c0_33 = arith.constant 0 : index
    %42 = vector.load %arg13[%c0_32, %c0_33] : memref<256x512xf32, #tpu.memory_space<vmem>>, vector<256x512xf32>
    %cst_34 = arith.constant dense<0.000000e+00> : vector<8x512xf32>
    %43 = tpu.matmul %41, %42, %cst_34 {dimension_numbers = #tpu.dot_dimension_numbers<[1], [0], [0], [1], [0, 0, 1, 1], [], []>} : vector<8x256xf32>, vector<256x512xf32>, vector<8x512xf32> -> vector<8x512xf32>
    %c0_35 = arith.constant 0 : index
    %c0_36 = arith.constant 0 : index
    %44 = vector.load %arg14[%c0_35, %c0_36] : memref<1x512xf32, #tpu.memory_space<vmem>>, vector<1x512xf32>
    %45 = vector.broadcast %44 : vector<1x512xf32> to vector<8x512xf32>
    %46 = arith.addf %43, %45 : vector<8x512xf32>
    %47 = arith.negf %46 : vector<8x512xf32>
    %48 = math.exp %47 : vector<8x512xf32>
    %cst_37 = arith.constant 1.000000e+00 : f32
    %49 = vector.broadcast %cst_37 : f32 to vector<8x512xf32>
    %50 = arith.addf %49, %48 : vector<8x512xf32>
    %51 = arith.divf %49, %50 : vector<8x512xf32>
    %c0_38 = arith.constant 0 : index
    %c0_39 = arith.constant 0 : index
    %52 = vector.load %arg15[%c0_38, %c0_39] : memref<8x512xf32, #tpu.memory_space<vmem>>, vector<8x512xf32>
    tpu.vector_store %arg15[%c0_38, %c0_39], %51 {strides = array<i32>} : memref<8x512xf32, #tpu.memory_space<vmem>>, vector<8x512xf32>,
    %c0_40 = arith.constant 0 : index
    %c0_41 = arith.constant 0 : index
    %53 = vector.load %arg16[%c0_40, %c0_41] : memref<8x128xf32, #tpu.memory_space<vmem>>, vector<8x128xf32>
    tpu.vector_store %arg16[%c0_40, %c0_41], %20 {strides = array<i32>} : memref<8x128xf32, #tpu.memory_space<vmem>>, vector<8x128xf32>,
    %c0_42 = arith.constant 0 : index
    %c0_43 = arith.constant 0 : index
    %54 = vector.load %arg17[%c0_42, %c0_43] : memref<8x128xf32, #tpu.memory_space<vmem>>, vector<8x128xf32>
    tpu.vector_store %arg17[%c0_42, %c0_43], %21 {strides = array<i32>} : memref<8x128xf32, #tpu.memory_space<vmem>>, vector<8x128xf32>,
    return
  }
  func.func @transform_0(%arg0: i32) -> (i32, i32) {
    %c0_i32 = arith.constant 0 : i32
    %c0_i32_0 = arith.constant 0 : i32
    return %arg0, %c0_i32 : i32, i32
  }
  func.func @transform_1(%arg0: i32) -> (i32, i32) {
    %c0_i32 = arith.constant 0 : i32
    %c0_i32_0 = arith.constant 0 : i32
    return %arg0, %c0_i32 : i32, i32
  }
  func.func @transform_2(%arg0: i32) -> (i32, i32) {
    %c0_i32 = arith.constant 0 : i32
    %c0_i32_0 = arith.constant 0 : i32
    %c0_i32_1 = arith.constant 0 : i32
    return %c0_i32, %c0_i32_0 : i32, i32
  }
  func.func @transform_3(%arg0: i32) -> (i32, i32) {
    %c0_i32 = arith.constant 0 : i32
    %c0_i32_0 = arith.constant 0 : i32
    %c0_i32_1 = arith.constant 0 : i32
    return %c0_i32, %c0_i32_0 : i32, i32
  }
  func.func @transform_4(%arg0: i32) -> (i32, i32) {
    %c0_i32 = arith.constant 0 : i32
    %c0_i32_0 = arith.constant 0 : i32
    %c0_i32_1 = arith.constant 0 : i32
    return %c0_i32, %c0_i32_0 : i32, i32
  }
  func.func @transform_5(%arg0: i32) -> (i32, i32) {
    %c0_i32 = arith.constant 0 : i32
    %c0_i32_0 = arith.constant 0 : i32
    %c0_i32_1 = arith.constant 0 : i32
    return %c0_i32, %c0_i32_0 : i32, i32
  }
  func.func @transform_6(%arg0: i32) -> (i32, i32) {
    %c0_i32 = arith.constant 0 : i32
    %c0_i32_0 = arith.constant 0 : i32
    %c0_i32_1 = arith.constant 0 : i32
    return %c0_i32, %c0_i32_0 : i32, i32
  }
  func.func @transform_7(%arg0: i32) -> (i32, i32) {
    %c0_i32 = arith.constant 0 : i32
    %c0_i32_0 = arith.constant 0 : i32
    %c0_i32_1 = arith.constant 0 : i32
    return %c0_i32, %c0_i32_0 : i32, i32
  }
  func.func @transform_8(%arg0: i32) -> (i32, i32) {
    %c0_i32 = arith.constant 0 : i32
    %c0_i32_0 = arith.constant 0 : i32
    %c0_i32_1 = arith.constant 0 : i32
    return %c0_i32, %c0_i32_0 : i32, i32
  }
  func.func @transform_9(%arg0: i32) -> (i32, i32) {
    %c0_i32 = arith.constant 0 : i32
    %c0_i32_0 = arith.constant 0 : i32
    %c0_i32_1 = arith.constant 0 : i32
    return %c0_i32, %c0_i32_0 : i32, i32
  }
  func.func @transform_10(%arg0: i32) -> (i32, i32) {
    %c0_i32 = arith.constant 0 : i32
    %c0_i32_0 = arith.constant 0 : i32
    %c0_i32_1 = arith.constant 0 : i32
    return %c0_i32, %c0_i32_0 : i32, i32
  }
  func.func @transform_11(%arg0: i32) -> (i32, i32) {
    %c0_i32 = arith.constant 0 : i32
    %c0_i32_0 = arith.constant 0 : i32
    %c0_i32_1 = arith.constant 0 : i32
    return %c0_i32, %c0_i32_0 : i32, i32
  }
  func.func @transform_12(%arg0: i32) -> (i32, i32) {
    %c0_i32 = arith.constant 0 : i32
    %c0_i32_0 = arith.constant 0 : i32
    %c0_i32_1 = arith.constant 0 : i32
    return %c0_i32, %c0_i32_0 : i32, i32
  }
  func.func @transform_13(%arg0: i32) -> (i32, i32) {
    %c0_i32 = arith.constant 0 : i32
    %c0_i32_0 = arith.constant 0 : i32
    %c0_i32_1 = arith.constant 0 : i32
    return %c0_i32, %c0_i32_0 : i32, i32
  }
  func.func @transform_14(%arg0: i32) -> (i32, i32) {
    %c0_i32 = arith.constant 0 : i32
    %c0_i32_0 = arith.constant 0 : i32
    return %arg0, %c0_i32 : i32, i32
  }
  func.func @transform_15(%arg0: i32) -> (i32, i32) {
    %c0_i32 = arith.constant 0 : i32
    %c0_i32_0 = arith.constant 0 : i32
    return %arg0, %c0_i32 : i32, i32
  }
  func.func @transform_16(%arg0: i32) -> (i32, i32) {
    %c0_i32 = arith.constant 0 : i32
    %c0_i32_0 = arith.constant 0 : i32
    return %arg0, %c0_i32 : i32, i32
  }
}

</mosaic_0001>

<bundles_post_ra>
// kernel: vae_forward.1
= control target key start
LH: loop header
LB: loop body
LE: loop exit
PB: predicated region body
PF: predicated region fallthrough
CT: control target
= control target key end

     0   :  { %s2314_s0 = inlined_call_operand.hbm [shape: f32[8,512], index: 0, kind: input, shape index: {}]   ;;  %s2315_s1 = inlined_call_operand.hbm [shape: f32[8,128], index: 1, kind: input, shape index: {}]   ;;  %s2316_s2 = inlined_call_operand.hbm [shape: f32[512,256], index: 2, kind: input, shape index: {}]   ;;  %s2317_s3 = inlined_call_operand.vmem [shape: f32[1,256], index: 3, kind: input, shape index: {}]   ;;  %s2318_s4 = inlined_call_operand.hbm [shape: f32[256,128], index: 4, kind: input, shape index: {}]   ;;  %s2319_s5 = inlined_call_operand.vmem [shape: f32[1,128], index: 5, kind: input, shape index: {}]   ;;  %s2320_s6 = inlined_call_operand.hbm [shape: f32[128,256], index: 6, kind: input, shape index: {}]   ;;  %s2321_s7 = inlined_call_operand.vmem [shape: f32[1,256], index: 7, kind: input, shape index: {}]   ;;  %s2322_s8 = inlined_call_operand.hbm [shape: f32[128,128], index: 8, kind: input, shape index: {}]   ;;  %s2323_s9 = inlined_call_operand.vmem [shape: f32[1,128], index: 9, kind: input, shape index: {}]   ;;  %s2324_s10 = inlined_call_operand.hbm [shape: f32[128,256], index: 10, kind: input, shape index: {}]   ;;  %s2325_s11 = inlined_call_operand.vmem [shape: f32[1,256], index: 11, kind: input, shape index: {}]   ;;  %s2326_s12 = inlined_call_operand.hbm [shape: f32[256,512], index: 12, kind: input, shape index: {}]   ;;  %s2327_s13 = inlined_call_operand.vmem [shape: f32[1,512], index: 13, kind: input, shape index: {}]   ;;  %s2328_s14 = inlined_call_operand.hbm [shape: f32[8,512], index: 14, kind: output, shape index: {0}]   ;;  %s2329_s15 = inlined_call_operand.hbm [shape: f32[8,128], index: 15, kind: output, shape index: {1}]   ;;  %s2330_s16 = inlined_call_operand.hbm [shape: f32[8,128], index: 16, kind: output, shape index: {2}]  }
   0x1   :  { %2332 = sst [smem:[#allocation27_spill]] %s2314_s0 }
   0x2   :  { %22 = vsyncpa [#allocation3], 0 }
   0x3   :  { %23 = vsyncpa [#allocation6], 0 }
   0x4   :  { %24 = vsyncpa [#allocation9], 0 }
   0x5   :  { %25 = vsyncpa [#allocation12], 0 }
   0x6   :  { %26 = vsyncpa [#allocation15], 0 }
   0x7   :  { %27 = vsyncpa [#allocation4], 0 }
   0x8   :  { %28 = vsyncpa [#allocation18], 0  ;;  %s2022_s21 = smov [#allocation5]   ;;  %s2023_s23 = smov [#allocation8]  }
   0x9   :  { %s45_s22 = sshll.u32 %s2022_s21, 4  ;;  %s68_s24 = sshll.u32 %s2023_s23, 4  ;;  %s46_s22 = int_to_ptr.vmem [resolvable:$true] %s45_s22  ;;  %s2127_s24 = int_to_ptr.vmem [resolvable:$true] %s68_s24 }
   0xa   :  { %s1766_s27 = scalar_lea.hbm %s2315_s1, 128 }
   0xb   :  { %p1767_p0 = scmp.ne.s32.totalorder %s2315_s1, %s1766_s27  ;;  %p1770_p1 = scmp.lt.u32.totalorder %s1766_s27, %s2315_s1 }
   0xd   :  { %p1772_p2 = pnand %p1770_p1, %p1767_p0 }
   0xf   :  { %1775 = shalt.err (!%p1772_p2)
}
  0x10   :  { %s1776_s17 = scalar_lea.vmem %s46_s22, 128  ;;  %p1781_p4 = scmp.lt.s32.totalorder %s46_s22, %s46_s22 }
  0x11   :  { %p1777_p3 = scmp.ne.s32.totalorder %s46_s22, %s1776_s17  ;;  %p1782_p5 = scmp.lt.s32.totalorder %s1776_s17, %s1776_s17 }
  0x13   :  { %p1783_p6 = por %p1782_p5, %p1781_p4 }
  0x15   :  { %p1784_p7 = pnand %p1783_p6, %p1777_p3 }
  0x17   :  { %1787 = shalt.err (!%p1784_p7)
}
  0x18   :  { %48 = dma.hbm_to_vmem [thread:$0]  %s2315_s1, 128, %s46_s22, [#allocation6]  }
  0x19   :  { %s1788_s23 = scalar_lea.hbm %s2318_s4, 4096 }
  0x1a   :  { %p1789_p8 = scmp.ne.s32.totalorder %s2318_s4, %s1788_s23  ;;  %p1792_p9 = scmp.lt.u32.totalorder %s1788_s23, %s2318_s4 }
  0x1c   :  { %p1794_p10 = pnand %p1792_p9, %p1789_p8 }
  0x1e   :  { %1797 = shalt.err (!%p1794_p10)
}
  0x1f   :  { %s1798_s29 = scalar_lea.vmem %s2127_s24, 4096  ;;  %p1803_p12 = scmp.lt.s32.totalorder %s2127_s24, %s2127_s24 }
  0x20   :  { %p1799_p11 = scmp.ne.s32.totalorder %s2127_s24, %s1798_s29  ;;  %p1804_p13 = scmp.lt.s32.totalorder %s1798_s29, %s1798_s29 }
  0x22   :  { %p1805_p0 = por %p1804_p13, %p1803_p12 }
  0x24   :  { %p1806_p1 = pnand %p1805_p0, %p1799_p11 }
  0x26   :  { %1809 = shalt.err (!%p1806_p1)
}
  0x27   :  { %s2024_s1 = smov 128   ;;  %s2025_s22 = smov 8  }
  0x28   :  { %74 = dma.hbm_to_vmem [thread:$0]  %s2318_s4, 4096, %s2127_s24, [#allocation9], %s2024_s1, %s2024_s1, %s2025_s22  }
  0x29   :  { %s2026_s17 = smov [#allocation11]   ;;  %s2027_s19 = smov [#allocation2]  }
  0x2a   :  { %s96_s18 = sshll.u32 %s2026_s17, 4  ;;  %s35_s20 = sshll.u32 %s2027_s19, 4  ;;  %s97_s18 = int_to_ptr.vmem [resolvable:$true] %s96_s18  ;;  %s36_s20 = int_to_ptr.vmem [resolvable:$true] %s35_s20 }
  0x2b   :  { %s1810_s25 = scalar_lea.hbm %s2322_s8, 2048 }
  0x2c   :  { %p1811_p2 = scmp.ne.s32.totalorder %s2322_s8, %s1810_s25  ;;  %p1814_p3 = scmp.lt.u32.totalorder %s1810_s25, %s2322_s8 }
  0x2e   :  { %p1816_p4 = pnand %p1814_p3, %p1811_p2 }
  0x30   :  { %1819 = shalt.err (!%p1816_p4)
}
  0x31   :  { %s1820_s4 = scalar_lea.vmem %s97_s18, 2048  ;;  %p1825_p6 = scmp.lt.s32.totalorder %s97_s18, %s97_s18 }
  0x32   :  { %p1821_p5 = scmp.ne.s32.totalorder %s97_s18, %s1820_s4  ;;  %p1826_p7 = scmp.lt.s32.totalorder %s1820_s4, %s1820_s4 }
  0x34   :  { %p1827_p8 = por %p1826_p7, %p1825_p6 }
  0x36   :  { %p1828_p9 = pnand %p1827_p8, %p1821_p5 }
  0x38   :  { %1831 = shalt.err (!%p1828_p9)
}
  0x39   :  { %102 = dma.hbm_to_vmem [thread:$0]  %s2322_s8, 2048, %s97_s18, [#allocation12], %s2024_s1, %s2024_s1, %s2025_s22  }
  0x3a   :  { %s2333_s19 = sld [smem:[#allocation27_spill]] }
  0x40   :  { %s1832_s21 = scalar_lea.hbm %s2333_s19, 512 }
  0x41   :  { %p1833_p10 = scmp.ne.s32.totalorder %s2333_s19, %s1832_s21  ;;  %p1836_p11 = scmp.lt.u32.totalorder %s1832_s21, %s2333_s19 }
  0x43   :  { %p1838_p12 = pnand %p1836_p11, %p1833_p10 }
  0x45   :  { %1841 = shalt.err (!%p1838_p12)
}
  0x46   :  { %s1842_s28 = scalar_lea.vmem %s36_s20, 512  ;;  %p1847_p0 = scmp.lt.s32.totalorder %s36_s20, %s36_s20 }
  0x47   :  { %p1843_p13 = scmp.ne.s32.totalorder %s36_s20, %s1842_s28  ;;  %p1848_p1 = scmp.lt.s32.totalorder %s1842_s28, %s1842_s28 }
  0x49   :  { %p1849_p2 = por %p1848_p1, %p1847_p0 }
  0x4b   :  { %p1850_p3 = pnand %p1849_p2, %p1843_p13 }
  0x4d   :  { %1853 = shalt.err (!%p1850_p3)
}
  0x4e   :  { %38 = dma.hbm_to_vmem [thread:$0]  %s2333_s19, 512, %s36_s20, [#allocation3]  }
  0x4f   :  { %s2028_s22 = smov [#allocation7]   ;;  %s1854_s24 = scalar_lea.hbm %s2316_s2, 16384 }
  0x50   :  { %s54_s18 = sshll.u32 %s2028_s22, 4  ;;  %p1855_p4 = scmp.ne.s32.totalorder %s2316_s2, %s1854_s24  ;;  %s55_s18 = int_to_ptr.vmem [resolvable:$true] %s54_s18 }
  0x51   :  { %p1858_p5 = scmp.lt.u32.totalorder %s1854_s24, %s2316_s2 }
  0x53   :  { %p1860_p6 = pnand %p1858_p5, %p1855_p4 }
  0x55   :  { %1863 = shalt.err (!%p1860_p6)
}
  0x56   :  { %s1864_s23 = scalar_lea.vmem %s55_s18, 16384  ;;  %p1869_p8 = scmp.lt.s32.totalorder %s55_s18, %s55_s18 }
  0x57   :  { %p1865_p7 = scmp.ne.s32.totalorder %s55_s18, %s1864_s23  ;;  %p1870_p9 = scmp.lt.s32.totalorder %s1864_s23, %s1864_s23 }
  0x59   :  { %p1871_p10 = por %p1870_p9, %p1869_p8 }
  0x5b   :  { %p1872_p11 = pnand %p1871_p10, %p1865_p7 }
  0x5d   :  { %1875 = shalt.err (!%p1872_p11)
}
  0x5e   :  { %s2029_s20 = smov 256   ;;  %s2030_s19 = smov 16  }
  0x5f   :  { %60 = dma.hbm_to_vmem [thread:$0]  %s2316_s2, 16384, %s55_s18, [#allocation6], %s2029_s20, %s2029_s20, %s2030_s19  }
  0x60   :  { %s2031_s27 = smov [#allocation10]   ;;  %s2032_s8 = smov [#allocation13]  }
  0x61   :  { %s82_s28 = sshll.u32 %s2031_s27, 4  ;;  %s110_s1 = sshll.u32 %s2032_s8, 4  ;;  %s83_s28 = int_to_ptr.vmem [resolvable:$true] %s82_s28  ;;  %s111_s1 = int_to_ptr.vmem [resolvable:$true] %s110_s1 }
  0x62   :  { %s1876_s4 = scalar_lea.hbm %s2320_s6, 4096 }
  0x63   :  { %p1877_p12 = scmp.ne.s32.totalorder %s2320_s6, %s1876_s4  ;;  %p1880_p13 = scmp.lt.u32.totalorder %s1876_s4, %s2320_s6 }
  0x65   :  { %p1882_p0 = pnand %p1880_p13, %p1877_p12 }
  0x67   :  { %1885 = shalt.err (!%p1882_p0)
}
  0x68   :  { %s1886_s2 = scalar_lea.vmem %s83_s28, 4096  ;;  %p1891_p2 = scmp.lt.s32.totalorder %s83_s28, %s83_s28 }
  0x69   :  { %p1887_p1 = scmp.ne.s32.totalorder %s83_s28, %s1886_s2  ;;  %p1892_p3 = scmp.lt.s32.totalorder %s1886_s2, %s1886_s2 }
  0x6b   :  { %p1893_p4 = por %p1892_p3, %p1891_p2 }
  0x6d   :  { %p1894_p5 = pnand %p1893_p4, %p1887_p1 }
  0x6f   :  { %1897 = shalt.err (!%p1894_p5)
}
  0x70   :  { %88 = dma.hbm_to_vmem [thread:$0]  %s2320_s6, 4096, %s83_s28, [#allocation9], %s2029_s20, %s2029_s20, %s2030_s19  }
  0x71   :  { %s1898_s25 = scalar_lea.hbm %s2324_s10, 4096 }
  0x72   :  { %p1899_p6 = scmp.ne.s32.totalorder %s2324_s10, %s1898_s25  ;;  %p1902_p7 = scmp.lt.u32.totalorder %s1898_s25, %s2324_s10 }
  0x74   :  { %p1904_p8 = pnand %p1902_p7, %p1899_p6 }
  0x76   :  { %1907 = shalt.err (!%p1904_p8)
}
  0x77   :  { %s1908_s4 = scalar_lea.vmem %s111_s1, 4096  ;;  %p1913_p10 = scmp.lt.s32.totalorder %s111_s1, %s111_s1 }
  0x78   :  { %p1909_p9 = scmp.ne.s32.totalorder %s111_s1, %s1908_s4  ;;  %p1914_p11 = scmp.lt.s32.totalorder %s1908_s4, %s1908_s4 }
  0x7a   :  { %p1915_p12 = por %p1914_p11, %p1913_p10 }
  0x7c   :  { %p1916_p13 = pnand %p1915_p12, %p1909_p9 }
  0x7e   :  { %1919 = shalt.err (!%p1916_p13)
}
  0x7f   :  { %116 = dma.hbm_to_vmem [thread:$0]  %s2324_s10, 4096, %s111_s1, [#allocation12], %s2029_s20, %s2029_s20, %s2030_s19  }
  0x80   :  { %s2033_s24 = smov [#allocation14]   ;;  %s1920_s2 = scalar_lea.hbm %s2326_s12, 16384 }
  0x81   :  { %s124_s30 = sshll.u32 %s2033_s24, 4  ;;  %p1921_p0 = scmp.ne.s32.totalorder %s2326_s12, %s1920_s2  ;;  %s125_s30 = int_to_ptr.vmem [resolvable:$true] %s124_s30 }
  0x82   :  { %p1924_p1 = scmp.lt.u32.totalorder %s1920_s2, %s2326_s12 }
  0x84   :  { %p1926_p2 = pnand %p1924_p1, %p1921_p0 }
  0x86   :  { %1929 = shalt.err (!%p1926_p2)
}
  0x87   :  { %s1930_s25 = scalar_lea.vmem %s125_s30, 16384  ;;  %p1935_p4 = scmp.lt.s32.totalorder %s125_s30, %s125_s30 }
  0x88   :  { %p1931_p3 = scmp.ne.s32.totalorder %s125_s30, %s1930_s25  ;;  %p1936_p5 = scmp.lt.s32.totalorder %s1930_s25, %s1930_s25 }
  0x8a   :  { %p1937_p6 = por %p1936_p5, %p1935_p4 }
  0x8c   :  { %p1938_p7 = pnand %p1937_p6, %p1931_p3 }
  0x8e   :  { %1941 = shalt.err (!%p1938_p7)
}
  0x8f   :  { %s2034_s10 = smov 512   ;;  %s2035_s20 = smov 32  }
  0x90   :  { %130 = dma.hbm_to_vmem [thread:$0]  %s2326_s12, 16384, %s125_s30, [#allocation15], %s2034_s10, %s2034_s10, %s2035_s20  }
  0x91   :  { %2008 = dma.done.wait [#allocation3], 512  }
  0x92   :  { %2009 = vsyncadd [#allocation3], 4294966784 }
  0x93   :  { %2010 = dma.done.wait [#allocation6], 16512  }
  0x94   :  { %2011 = vsyncadd [#allocation6], 4294950784 }
  0x95   :  { %2012 = dma.done.wait [#allocation9], 8192  }
  0x96   :  { %2013 = vsyncadd [#allocation9], 4294959104 }
  0x97   :  { %2014 = dma.done.wait [#allocation12], 6144  }
  0x98   :  { %2015 = vsyncadd [#allocation12], 4294961152 }
  0x99   :  { %2016 = dma.done.wait [#allocation15], 16384  }
  0x9a   :  { %2017 = vsyncadd [#allocation15], 4294950912  ;;  %v162_v0 = vld [vmem:[#allocation7 + $0x8] sm:$0xff]  ;;  %v164_v1 = vld [vmem:[#allocation7 + $0x18] sm:$0xff]  ;;  %vm2038_vm0 = vmmov 0   ;;  %s2039_s6 = smov [#allocation17]  }
  0x9b   :  { %v161_v2 = vld [vmem:[#allocation7] sm:$0xff]  ;;  %v1348_v3 = vpack.c.bf16 %v164_v1, %v162_v0  ;;  %v163_v4 = vld [vmem:[#allocation7 + $0x10] sm:$0xff]  ;;  %v166_v5 = vld [vmem:[#allocation7 + $0x28] sm:$0xff]  ;;  %s1225_s28 = sshll.u32 %s2039_s6, 4  ;;  %s1226_s28 = int_to_ptr.vmem [resolvable:$true] %s1225_s28 }
  0x9c   :  { %v168_v6 = vld [vmem:[#allocation7 + $0x38] sm:$0xff]  ;;  %v1350_v7 = vpack.c.bf16 %v163_v4, %v161_v2  ;;  %v165_v9 = vld [vmem:[#allocation7 + $0x20] sm:$0xff]  ;;  %v167_v10 = vld [vmem:[#allocation7 + $0x30] sm:$0xff]  ;;  %s1942_s24 = scalar_lea.vmem %s1226_s28, 128  ;;  %p1947_p9 = scmp.lt.s32.totalorder %s1226_s28, %s1226_s28 }
  0x9d   :  { %v1352_v8 = vpack.c.bf16 %v168_v6, %v166_v5  ;;  %v170_v11 = vld [vmem:[#allocation7 + $0x48] sm:$0xff]  ;;  %1349 = vmatprep.subr.bf16.mxu0 %v1348_v3  ;;  %v172_v12 = vld [vmem:[#allocation7 + $0x58] sm:$0xff]  ;;  %v1354_v13 = vpack.c.bf16 %v167_v10, %v165_v9  ;;  %v169_v15 = vld [vmem:[#allocation7 + $0x40] sm:$0xff]  ;;  %p1943_p8 = scmp.ne.s32.totalorder %s1226_s28, %s1942_s24  ;;  %p1948_p10 = scmp.lt.s32.totalorder %s1942_s24, %s1942_s24 }
  0x9e   :  { %1351 = vmatpush1.bf16.msra.mxu0 %v1350_v7  ;;  %v1356_v14 = vpack.c.bf16 %v172_v12, %v170_v11  ;;  %v171_v16 = vld [vmem:[#allocation7 + $0x50] sm:$0xff]  ;;  %v174_v17 = vld [vmem:[#allocation7 + $0x68] sm:$0xff]  ;;  %v176_v18 = vld [vmem:[#allocation7 + $0x78] sm:$0xff] }
  0x9f   :  { %1353 = vmatprep.subr.bf16.mxu0 %v1352_v8  ;;  %v1358_v19 = vpack.c.bf16 %v171_v16, %v169_v15  ;;  %v1360_v20 = vpack.c.bf16 %v176_v18, %v174_v17  ;;  %v173_v21 = vld [vmem:[#allocation7 + $0x60] sm:$0xff]  ;;  %v175_v22 = vld [vmem:[#allocation7 + $0x70] sm:$0xff]  ;;  %v178_v23 = vld [vmem:[#allocation7 + $0x88] sm:$0xff]  ;;  %p1949_p11 = por %p1948_p10, %p1947_p9 }
  0xa0   :  { %v180_v24 = vld [vmem:[#allocation7 + $0x98] sm:$0xff]  ;;  %v1362_v25 = vpack.c.bf16 %v175_v22, %v173_v21  ;;  %v177_v27 = vld [vmem:[#allocation7 + $0x80] sm:$0xff]  ;;  %v179_v28 = vld [vmem:[#allocation7 + $0x90] sm:$0xff] }
  0xa1   :  { %v1364_v26 = vpack.c.bf16 %v180_v24, %v178_v23  ;;  %v182_v29 = vld [vmem:[#allocation7 + $0xa8] sm:$0xff]  ;;  %v184_v30 = vld [vmem:[#allocation7 + $0xb8] sm:$0xff]  ;;  %v1366_v31 = vpack.c.bf16 %v179_v28, %v177_v27  ;;  %v181_v33 = vld [vmem:[#allocation7 + $0xa0] sm:$0xff]  ;;  %p1950_p12 = pnand %p1949_p11, %p1943_p8 }
  0xa2   :  { %1355 = vmatpush1.bf16.msra.mxu0 %v1354_v13  ;;  %v1368_v32 = vpack.c.bf16 %v184_v30, %v182_v29  ;;  %v183_v34 = vld [vmem:[#allocation7 + $0xb0] sm:$0xff]  ;;  %v186_v35 = vld [vmem:[#allocation7 + $0xc8] sm:$0xff]  ;;  %v188_v36 = vld [vmem:[#allocation7 + $0xd8] sm:$0xff] }
  0xa3   :  { %1357 = vmatprep.subr.bf16.mxu0 %v1356_v14  ;;  %v1370_v37 = vpack.c.bf16 %v183_v34, %v181_v33  ;;  %v1372_v38 = vpack.c.bf16 %v188_v36, %v186_v35  ;;  %v185_v39 = vld [vmem:[#allocation7 + $0xc0] sm:$0xff]  ;;  %v187_v40 = vld [vmem:[#allocation7 + $0xd0] sm:$0xff]  ;;  %v190_v42 = vld [vmem:[#allocation7 + $0xe8] sm:$0xff] }
  0xa4   :  { %v158_v41 = vld [vmem:[#allocation2 + $0x8] sm:$0xff]  ;;  %v192_v43 = vld [vmem:[#allocation7 + $0xf8] sm:$0xff]  ;;  %v1374_v44 = vpack.c.bf16 %v187_v40, %v185_v39  ;;  %v191_v47 = vld [vmem:[#allocation7 + $0xf0] sm:$0xff] }
  0xa5   :  { %365 = vmatprep.mubr.f32.mxu0 %v158_v41  ;;  %v1376_v45 = vpack.c.bf16 %v192_v43, %v190_v42  ;;  %v189_v46 = vld [vmem:[#allocation7 + $0xe0] sm:$0xff]  ;;  %v194_v48 = vld [vmem:[#allocation7 + $0x108] sm:$0xff]  ;;  %v196_v49 = vld [vmem:[#allocation7 + $0x118] sm:$0xff] }
  0xa6   :  { %1359 = vmatpush1.bf16.msra.mxu0 %v1358_v19  ;;  %v1378_v50 = vpack.c.bf16 %v191_v47, %v189_v46  ;;  %v1380_v51 = vpack.c.bf16 %v196_v49, %v194_v48  ;;  %v193_v52 = vld [vmem:[#allocation7 + $0x100] sm:$0xff]  ;;  %v195_v53 = vld [vmem:[#allocation7 + $0x110] sm:$0xff]  ;;  %v198_v54 = vld [vmem:[#allocation7 + $0x128] sm:$0xff] }
  0xa7   :  { %1361 = vmatprep.subr.bf16.mxu0 %v1360_v20  ;;  %v200_v55 = vld [vmem:[#allocation7 + $0x138] sm:$0xff]  ;;  %v1382_v56 = vpack.c.bf16 %v195_v53, %v193_v52  ;;  %v197_v58 = vld [vmem:[#allocation7 + $0x120] sm:$0xff]  ;;  %v199_v59 = vld [vmem:[#allocation7 + $0x130] sm:$0xff] }
  0xa8   :  { %v1384_v57 = vpack.c.bf16 %v200_v55, %v198_v54  ;;  %v202_v60 = vld [vmem:[#allocation7 + $0x148] sm:$0xff]  ;;  %v204_v61 = vld [vmem:[#allocation7 + $0x158] sm:$0xff]  ;;  %v1386_v62 = vpack.c.bf16 %v199_v59, %v197_v58  ;;  %v201_v0 = vld [vmem:[#allocation7 + $0x140] sm:$0xff] }
  0xa9   :  { %v1388_v63 = vpack.c.bf16 %v204_v61, %v202_v60  ;;  %v203_v1 = vld [vmem:[#allocation7 + $0x150] sm:$0xff]  ;;  %v206_v2 = vld [vmem:[#allocation7 + $0x168] sm:$0xff]  ;;  %v208_v3 = vld [vmem:[#allocation7 + $0x178] sm:$0xff] }
  0xaa   :  { %1363 = vmatpush1.bf16.msra.mxu0 %v1362_v25  ;;  %v1390_v4 = vpack.c.bf16 %v203_v1, %v201_v0  ;;  %v1392_v5 = vpack.c.bf16 %v208_v3, %v206_v2  ;;  %v205_v6 = vld [vmem:[#allocation7 + $0x160] sm:$0xff]  ;;  %v207_v7 = vld [vmem:[#allocation7 + $0x170] sm:$0xff]  ;;  %v210_v8 = vld [vmem:[#allocation7 + $0x188] sm:$0xff] }
  0xab   :  { %1365 = vmatprep.subr.bf16.mxu0 %v1364_v26  ;;  %v212_v9 = vld [vmem:[#allocation7 + $0x198] sm:$0xff]  ;;  %v209_v10 = vld [vmem:[#allocation7 + $0x180] sm:$0xff]  ;;  %v211_v11 = vld [vmem:[#allocation7 + $0x190] sm:$0xff]  ;;  %v1394_v12 = vpack.c.bf16 %v207_v7, %v205_v6 }
  0xac   :  { %v214_v13 = vld [vmem:[#allocation7 + $0x1a8] sm:$0xff]  ;;  %v216_v14 = vld [vmem:[#allocation7 + $0x1b8] sm:$0xff]  ;;  %v461_v15 = vld [vmem:[#allocation8 + $0x80] sm:$0xff]  ;;  %v1396_v18 = vpack.c.bf16 %v212_v9, %v210_v8  ;;  %v1398_v29 = vpack.c.bf16 %v211_v11, %v209_v10 }
  0xad   :  { %v462_v16 = vld [vmem:[#allocation8 + $0x88] sm:$0xff]  ;;  %v445_v17 = vld [vmem:[#allocation8] sm:$0xff]  ;;  %v463_v21 = vld [vmem:[#allocation8 + $0x90] sm:$0xff]  ;;  %v1400_v33 = vpack.c.bf16 %v216_v14, %v214_v13 }
  0xae   :  { %1367 = vmatpush1.bf16.msra.mxu0 %v1366_v31  ;;  %v1476_v19 = vpack.c.bf16 %v462_v16, %v461_v15  ;;  %v446_v20 = vld [vmem:[#allocation8 + $0x8] sm:$0xff]  ;;  %v464_v22 = vld [vmem:[#allocation8 + $0x98] sm:$0xff]  ;;  %v447_v25 = vld [vmem:[#allocation8 + $0x10] sm:$0xff] }
  0xaf   :  { %1369 = vmatprep.subr.bf16.mxu0 %v1368_v32  ;;  %v1478_v23 = vpack.c.bf16 %v446_v20, %v445_v17  ;;  %v1480_v24 = vpack.c.bf16 %v464_v22, %v463_v21  ;;  %v448_v26 = vld [vmem:[#allocation8 + $0x18] sm:$0xff]  ;;  %v465_v27 = vld [vmem:[#allocation8 + $0xa0] sm:$0xff]  ;;  %v466_v28 = vld [vmem:[#allocation8 + $0xa8] sm:$0xff] }
  0xb0   :  { %1477 = vmatprep.subr.bf16.mxu1 %v1476_v19  ;;  %v213_v30 = vld [vmem:[#allocation7 + $0x1a0] sm:$0xff]  ;;  %v215_v31 = vld [vmem:[#allocation7 + $0x1b0] sm:$0xff]  ;;  %v1482_v32 = vpack.c.bf16 %v448_v26, %v447_v25  ;;  %v218_v34 = vld [vmem:[#allocation7 + $0x1c8] sm:$0xff]  ;;  %v1484_v35 = vpack.c.bf16 %v466_v28, %v465_v27 }
  0xb1   :  { %1479 = vmatpush3.bf16.msra.mxu1 %v1478_v23  ;;  %v449_v36 = vld [vmem:[#allocation8 + $0x20] sm:$0xff]  ;;  %v467_v39 = vld [vmem:[#allocation8 + $0xb0] sm:$0xff]  ;;  %v468_v40 = vld [vmem:[#allocation8 + $0xb8] sm:$0xff]  ;;  %v1402_v41 = vpack.c.bf16 %v215_v31, %v213_v30 }
  0xb2   :  { %1371 = vmatpush1.bf16.msra.mxu0 %v1370_v37  ;;  %1481 = vmatprep.subr.bf16.mxu1 %v1480_v24  ;;  %v450_v37 = vld [vmem:[#allocation8 + $0x28] sm:$0xff]  ;;  %v217_v42 = vld [vmem:[#allocation7 + $0x1c0] sm:$0xff]  ;;  %v219_v43 = vld [vmem:[#allocation7 + $0x1d0] sm:$0xff]  ;;  %v1488_v47 = vpack.c.bf16 %v468_v40, %v467_v39 }
  0xb3   :  { %1373 = vmatprep.subr.bf16.mxu0 %v1372_v38  ;;  %v220_v38 = vld [vmem:[#allocation7 + $0x1d8] sm:$0xff]  ;;  %v222_v46 = vld [vmem:[#allocation7 + $0x1e8] sm:$0xff]  ;;  %v451_v48 = vld [vmem:[#allocation8 + $0x30] sm:$0xff]  ;;  %v1406_v53 = vpack.c.bf16 %v219_v43, %v217_v42 }
  0xb4   :  { %v452_v49 = vld [vmem:[#allocation8 + $0x38] sm:$0xff]  ;;  %v470_v52 = vld [vmem:[#allocation8 + $0xc8] sm:$0xff]  ;;  %v221_v54 = vld [vmem:[#allocation7 + $0x1e0] sm:$0xff] }
  0xb5   :  { %1483 = vmatpush3.bf16.msra.mxu1 %v1482_v32  ;;  %v223_v55 = vld [vmem:[#allocation7 + $0x1f0] sm:$0xff]  ;;  %v226_v58 = vld [vmem:[#allocation7 + $0x208] sm:$0xff]  ;;  %v453_v60 = vld [vmem:[#allocation8 + $0x40] sm:$0xff] }
  0xb6   :  { %1375 = vmatpush1.bf16.msra.mxu0 %v1374_v44  ;;  %v1486_v44 = vpack.c.bf16 %v450_v37, %v449_v36  ;;  %1485 = vmatprep.subr.bf16.mxu1 %v1484_v35  ;;  %v454_v61 = vld [vmem:[#allocation8 + $0x48] sm:$0xff]  ;;  %v472_v0 = vld [vmem:[#allocation8 + $0xd8] sm:$0xff]  ;;  %v1410_v1 = vpack.c.bf16 %v223_v55, %v221_v54  ;;  %v455_v9 = vld [vmem:[#allocation8 + $0x50] sm:$0xff] }
  0xb7   :  { %1377 = vmatprep.subr.bf16.mxu0 %v1376_v45  ;;  %v1404_v45 = vpack.c.bf16 %v220_v38, %v218_v34  ;;  %v1494_v2 = vpack.c.bf16 %v454_v61, %v453_v60  ;;  %v230_v6 = vld [vmem:[#allocation7 + $0x228] sm:$0xff]  ;;  %v232_v8 = vld [vmem:[#allocation7 + $0x238] sm:$0xff]  ;;  %v473_v11 = vld [vmem:[#allocation8 + $0xe0] sm:$0xff] }
  0xb8   :  { %v456_v10 = vld [vmem:[#allocation8 + $0x58] sm:$0xff]  ;;  %v1416_v15 = vpack.c.bf16 %v232_v8, %v230_v6  ;;  %v229_v16 = vld [vmem:[#allocation7 + $0x220] sm:$0xff]  ;;  %v231_v17 = vld [vmem:[#allocation7 + $0x230] sm:$0xff] }
  0xb9   :  { %1487 = vmatpush3.bf16.msra.mxu1 %v1486_v44  ;;  %v157_v13 = vld [vmem:[#allocation2] sm:$0xff]  ;;  %v1498_v19 = vpack.c.bf16 %v456_v10, %v455_v9  ;;  %v234_v20 = vld [vmem:[#allocation7 + $0x248] sm:$0xff]  ;;  %v1418_v23 = vpack.c.bf16 %v231_v17, %v229_v16  ;;  %v233_v25 = vld [vmem:[#allocation7 + $0x240] sm:$0xff] }
  0xba   :  { %1379 = vmatpush1.bf16.msra.mxu0 %v1378_v50  ;;  %v224_v50 = vld [vmem:[#allocation7 + $0x1f8] sm:$0xff]  ;;  %1489 = vmatprep.subr.bf16.mxu1 %v1488_v47  ;;  %v235_v26 = vld [vmem:[#allocation7 + $0x250] sm:$0xff]  ;;  %v238_v27 = vld [vmem:[#allocation7 + $0x268] sm:$0xff] }
  0xbb   :  { %1381 = vmatprep.subr.bf16.mxu0 %v1380_v51  ;;  %v469_v51 = vld [vmem:[#allocation8 + $0xc0] sm:$0xff]  ;;  %v236_v21 = vld [vmem:[#allocation7 + $0x258] sm:$0xff]  ;;  %v239_v32 = vld [vmem:[#allocation7 + $0x270] sm:$0xff] }
  0xbc   :  { %v1492_v59 = vpack.c.bf16 %v470_v52, %v469_v51  ;;  %v1420_v24 = vpack.c.bf16 %v236_v21, %v234_v20  ;;  %v240_v28 = vld [vmem:[#allocation7 + $0x278] sm:$0xff]  ;;  %v237_v31 = vld [vmem:[#allocation7 + $0x260] sm:$0xff]  ;;  %v243_v38 = vld [vmem:[#allocation7 + $0x290] sm:$0xff] }
  0xbd   :  { %v1424_v30 = vpack.c.bf16 %v240_v28, %v238_v27  ;;  %v244_v34 = vld [vmem:[#allocation7 + $0x298] sm:$0xff]  ;;  %v1426_v35 = vpack.c.bf16 %v239_v32, %v237_v31  ;;  %v241_v37 = vld [vmem:[#allocation7 + $0x280] sm:$0xff]  ;;  %v246_v39 = vld [vmem:[#allocation7 + $0x2a8] sm:$0xff] }
  0xbe   :  { %1383 = vmatpush1.bf16.msra.mxu0 %v1382_v56  ;;  %v1490_v56 = vpack.c.bf16 %v452_v49, %v451_v48  ;;  %v248_v40 = vld [vmem:[#allocation7 + $0x2b8] sm:$0xff]  ;;  %v245_v43 = vld [vmem:[#allocation7 + $0x2a0] sm:$0xff]  ;;  %v247_v44 = vld [vmem:[#allocation7 + $0x2b0] sm:$0xff] }
  0xbf   :  { %1385 = vmatprep.subr.bf16.mxu0 %v1384_v57  ;;  %v1408_v57 = vpack.c.bf16 %v224_v50, %v222_v46  ;;  %v1432_v42 = vpack.c.bf16 %v248_v40, %v246_v39  ;;  %v252_v46 = vld [vmem:[#allocation7 + $0x2d8] sm:$0xff]  ;;  %v1434_v47 = vpack.c.bf16 %v247_v44, %v245_v43  ;;  %v249_v49 = vld [vmem:[#allocation7 + $0x2c0] sm:$0xff]  ;;  %v251_v50 = vld [vmem:[#allocation7 + $0x2d0] sm:$0xff] }
  0xc0   :  { %1491 = vmatpush3.bf16.msra.mxu1 %v1490_v56  ;;  %v254_v51 = vld [vmem:[#allocation7 + $0x2e8] sm:$0xff]  ;;  %v256_v52 = vld [vmem:[#allocation7 + $0x2f8] sm:$0xff]  ;;  %v253_v55 = vld [vmem:[#allocation7 + $0x2e0] sm:$0xff] }
  0xc1   :  { %1493 = vmatprep.subr.bf16.mxu1 %v1492_v59  ;;  %v1440_v54 = vpack.c.bf16 %v256_v52, %v254_v51  ;;  %v255_v56 = vld [vmem:[#allocation7 + $0x2f0] sm:$0xff]  ;;  %v257_v61 = vld [vmem:[#allocation7 + $0x300] sm:$0xff]  ;;  %v268_v6 = vld [vmem:[#allocation7 + $0x358] sm:$0xff] }
  0xc2   :  { %1387 = vmatpush1.bf16.msra.mxu0 %v1386_v62  ;;  %v228_v62 = vld [vmem:[#allocation7 + $0x218] sm:$0xff]  ;;  %v1442_v59 = vpack.c.bf16 %v255_v56, %v253_v55  ;;  %v265_v9 = vld [vmem:[#allocation7 + $0x340] sm:$0xff]  ;;  %v267_v10 = vld [vmem:[#allocation7 + $0x350] sm:$0xff]  ;;  %v291_v55 = vlaneseq }
  0xc3   :  { %1389 = vmatprep.subr.bf16.mxu0 %v1388_v63  ;;  %v471_v63 = vld [vmem:[#allocation8 + $0xd0] sm:$0xff]  ;;  %v1412_v3 = vpack.c.bf16 %v228_v62, %v226_v58  ;;  %v260_v58 = vld [vmem:[#allocation7 + $0x318] sm:$0xff]  ;;  %v274_v17 = vld [vmem:[#allocation7 + $0x388] sm:$0xff] }
  0xc4   :  { %v1496_v7 = vpack.c.bf16 %v472_v0, %v471_v63  ;;  %1495 = vmatpush3.bf16.msra.mxu1 %v1494_v2  ;;  %v259_v62 = vld [vmem:[#allocation7 + $0x310] sm:$0xff]  ;;  %v262_v63 = vld [vmem:[#allocation7 + $0x328] sm:$0xff]  ;;  %v264_v0 = vld [vmem:[#allocation7 + $0x338] sm:$0xff]  ;;  %v2239_v56 = vshrl.u32 %v291_v55, 7 }
  0xc5   :  { %v1448_v2 = vpack.c.bf16 %v264_v0, %v262_v63  ;;  %v271_v16 = vld [vmem:[#allocation7 + $0x370] sm:$0xff]  ;;  %v273_v21 = vld [vmem:[#allocation7 + $0x380] sm:$0xff]  ;;  %v458_v44 = vld [vmem:[#allocation8 + $0x68] sm:$0xff] }
  0xc6   :  { %1391 = vmatpush1.bf16.msra.mxu0 %v1390_v4  ;;  %v225_v4 = vld [vmem:[#allocation7 + $0x200] sm:$0xff]  ;;  %1497 = vmatprep.subr.bf16.mxu1 %v1496_v7  ;;  %v279_v28 = vld [vmem:[#allocation7 + $0x3b0] sm:$0xff]  ;;  %v556_v52 = vld [vmem:[#allocation10 + $0x8] sm:$0xff] }
  0xc7   :  { %1393 = vmatprep.subr.bf16.mxu0 %v1392_v5  ;;  %v227_v5 = vld [vmem:[#allocation7 + $0x210] sm:$0xff]  ;;  %v277_v27 = vld [vmem:[#allocation7 + $0x3a0] sm:$0xff] }
  0xc8   :  { %v1414_v14 = vpack.c.bf16 %v227_v5, %v225_v4  ;;  %1499 = vmatpush3.bf16.msra.mxu1 %v1498_v19  ;;  %v263_v4 = vld [vmem:[#allocation7 + $0x330] sm:$0xff]  ;;  %v266_v5 = vld [vmem:[#allocation7 + $0x348] sm:$0xff]  ;;  %v1466_v31 = vpack.c.bf16 %v279_v28, %v277_v27  ;;  %v285_v39 = vld [vmem:[#allocation7 + $0x3e0] sm:$0xff] }
  0xc9   :  { %v1452_v8 = vpack.c.bf16 %v268_v6, %v266_v5  ;;  %v287_v40 = vld [vmem:[#allocation7 + $0x3f0] sm:$0xff]  ;;  %v457_v43 = vld [vmem:[#allocation8 + $0x60] sm:$0xff]  ;;  %v562_v5 = vld [vmem:[#allocation10 + $0x38] sm:$0xff] }
  0xca   :  { %1395 = vmatpush1.bf16.msra.mxu0 %v1394_v12  ;;  %v474_v12 = vld [vmem:[#allocation8 + $0xe8] sm:$0xff]  ;;  %v571_v28 = vld [vmem:[#allocation10 + $0x80] sm:$0xff] }
  0xcb   :  { %1397 = vmatprep.subr.bf16.mxu0 %v1396_v18  ;;  %v160_v18 = vld [vmem:[#allocation2 + $0x18] sm:$0xff]  ;;  %v1500_v22 = vpack.c.bf16 %v474_v12, %v473_v11  ;;  %v270_v11 = vld [vmem:[#allocation7 + $0x368] sm:$0xff]  ;;  %v272_v12 = vld [vmem:[#allocation7 + $0x378] sm:$0xff] }
  0xcc   :  { %v676_v55 = vld [vmem:[#allocation11] sm:$0xff] }
  0xcd   :  { %1501 = vmatprep.subr.bf16.mxu1 %v1500_v22  ;;  %v275_v22 = vld [vmem:[#allocation7 + $0x390] sm:$0xff] }
  0xce   :  { %1399 = vmatpush1.bf16.msra.mxu0 %v1398_v29  ;;  %v1422_v29 = vpack.c.bf16 %v235_v26, %v233_v25  ;;  %v1462_v25 = vpack.c.bf16 %v275_v22, %v273_v21  ;;  %v567_v22 = vld [vmem:[#allocation10 + $0x60] sm:$0xff] }
  0xcf   :  { %1401 = vmatprep.subr.bf16.mxu0 %v1400_v33  ;;  %v242_v33 = vld [vmem:[#allocation7 + $0x288] sm:$0xff] }
  0xd0   :  { %v1428_v36 = vpack.c.bf16 %v244_v34, %v242_v33  ;;  %v281_v33 = vld [vmem:[#allocation7 + $0x3c0] sm:$0xff]  ;;  %v283_v34 = vld [vmem:[#allocation7 + $0x3d0] sm:$0xff] }
  0xd2   :  { %1403 = vmatpush1.bf16.msra.mxu0 %v1402_v41  ;;  %v1430_v41 = vpack.c.bf16 %v243_v38, %v241_v37  ;;  %v1470_v37 = vpack.c.bf16 %v283_v34, %v281_v33  ;;  %v575_v34 = vld [vmem:[#allocation10 + $0xa0] sm:$0xff] }
  0xd3   :  { %1405 = vmatprep.subr.bf16.mxu0 %v1404_v45  ;;  %v250_v45 = vld [vmem:[#allocation7 + $0x2c8] sm:$0xff] }
  0xd4   :  { %v1436_v48 = vpack.c.bf16 %v252_v46, %v250_v45  ;;  %v1502_v45 = vpack.c.bf16 %v458_v44, %v457_v43  ;;  %v475_v46 = vld [vmem:[#allocation8 + $0xf0] sm:$0xff]  ;;  %v584_v43 = vld [vmem:[#allocation10 + $0xe8] sm:$0xff]  ;;  %v586_v44 = vld [vmem:[#allocation10 + $0xf8] sm:$0xff] }
  0xd6   :  { %1407 = vmatpush1.bf16.msra.mxu0 %v1406_v53  ;;  %v1438_v53 = vpack.c.bf16 %v251_v50, %v249_v49  ;;  %1503 = vmatpush3.bf16.msra.mxu1 %v1502_v45  ;;  %v459_v49 = vld [vmem:[#allocation8 + $0x70] sm:$0xff]  ;;  %v460_v50 = vld [vmem:[#allocation8 + $0x78] sm:$0xff]  ;;  %v1536_v45 = vpack.c.bf16 %v586_v44, %v584_v43  ;;  %v779_v44 = vld [vmem:[#allocation13 + $0x48] sm:$0xff] }
  0xd7   :  { %1409 = vmatprep.subr.bf16.mxu0 %v1408_v57  ;;  %v258_v57 = vld [vmem:[#allocation7 + $0x308] sm:$0xff]  ;;  %v1506_v51 = vpack.c.bf16 %v460_v50, %v459_v49  ;;  %v2036_v49 = vmov 0.0   ;;  %v2037_v50 = vmov 0.0|0.0   ;;  %v776_v43 = vld [vmem:[#allocation13 + $0x30] sm:$0xff] }
  0xd8   :  { %v1444_v60 = vpack.c.bf16 %v260_v58, %v258_v57  ;;  %v2242_v57 = vsub.s32 0, %v2239_v56  ;;  %v289_v58 = vld [vmem:[%s2317_s3] sm:$0x3] }
  0xda   :  { %1411 = vmatpush1.bf16.msra.mxu0 %v1410_v1  ;;  %v1446_v1 = vpack.c.bf16 %v259_v62, %v257_v61 }
  0xdb   :  { %1413 = vmatprep.subr.bf16.mxu0 %v1412_v3  ;;  %v261_v3 = vld [vmem:[#allocation7 + $0x320] sm:$0xff] }
  0xdc   :  { %v1450_v7 = vpack.c.bf16 %v263_v4, %v261_v3  ;;  %v560_v4 = vld [vmem:[#allocation10 + $0x28] sm:$0xff] }
  0xdd   :  { %366 = vmatmul.mubr.f32.vlgmr.msra.gmra.mrb[0].mxu0 %v157_v13  ;;  %v1454_v13 = vpack.c.bf16 %v267_v10, %v265_v9  ;;  %v1512_v9 = vpack.c.bf16 %v562_v5, %v560_v4  ;;  %v559_v10 = vld [vmem:[#allocation10 + $0x20] sm:$0xff]  ;;  %v682_v5 = vld [vmem:[#allocation11 + $0x30] sm:$0xff] }
  0xde   :  { %1415 = vmatpush1.bf16.msra.mxu0 %v1414_v14  ;;  %436 = vmatprep.mubr.f32.mxu0 %v160_v18  ;;  %v1456_v14 = vpack.c.bf16 %v272_v12, %v270_v11  ;;  %v276_v18 = vld [vmem:[#allocation7 + $0x398] sm:$0xff]  ;;  %v561_v11 = vld [vmem:[#allocation10 + $0x30] sm:$0xff]  ;;  %v564_v12 = vld [vmem:[#allocation10 + $0x48] sm:$0xff] }
  0xdf   :  { %1417 = vmatprep.subr.bf16.mxu0 %v1416_v15  ;;  %v269_v15 = vld [vmem:[#allocation7 + $0x360] sm:$0xff]  ;;  %v1460_v20 = vpack.c.bf16 %v276_v18, %v274_v17  ;;  %v565_v17 = vld [vmem:[#allocation10 + $0x50] sm:$0xff]  ;;  %v568_v18 = vld [vmem:[#allocation10 + $0x68] sm:$0xff] }
  0xe0   :  { %v1458_v19 = vpack.c.bf16 %v271_v16, %v269_v15  ;;  %v563_v16 = vld [vmem:[#allocation10 + $0x40] sm:$0xff] }
  0xe2   :  { %1419 = vmatpush1.bf16.msra.mxu0 %v1418_v23  ;;  %v278_v23 = vld [vmem:[#allocation7 + $0x3a8] sm:$0xff] }
  0xe3   :  { %1421 = vmatprep.subr.bf16.mxu0 %v1420_v24  ;;  %v280_v24 = vld [vmem:[#allocation7 + $0x3b8] sm:$0xff] }
  0xe4   :  { %v1464_v26 = vpack.c.bf16 %v280_v24, %v278_v23  ;;  %v569_v23 = vld [vmem:[#allocation10 + $0x70] sm:$0xff]  ;;  %v572_v24 = vld [vmem:[#allocation10 + $0x88] sm:$0xff] }
  0xe6   :  { %1423 = vmatpush1.bf16.msra.mxu0 %v1422_v29  ;;  %v282_v29 = vld [vmem:[#allocation7 + $0x3c8] sm:$0xff] }
  0xe7   :  { %1425 = vmatprep.subr.bf16.mxu0 %v1424_v30  ;;  %v284_v30 = vld [vmem:[#allocation7 + $0x3d8] sm:$0xff] }
  0xe8   :  { %v1468_v32 = vpack.c.bf16 %v284_v30, %v282_v29  ;;  %v573_v29 = vld [vmem:[#allocation10 + $0x90] sm:$0xff]  ;;  %v576_v30 = vld [vmem:[#allocation10 + $0xa8] sm:$0xff] }
  0xea   :  { %1427 = vmatpush1.bf16.msra.mxu0 %v1426_v35  ;;  %v286_v35 = vld [vmem:[#allocation7 + $0x3e8] sm:$0xff] }
  0xeb   :  { %1429 = vmatprep.subr.bf16.mxu0 %v1428_v36  ;;  %v288_v36 = vld [vmem:[#allocation7 + $0x3f8] sm:$0xff] }
  0xec   :  { %v1472_v38 = vpack.c.bf16 %v288_v36, %v286_v35  ;;  %v577_v35 = vld [vmem:[#allocation10 + $0xb0] sm:$0xff] }
  0xed   :  { %v1530_v36 = vpack.c.bf16 %v577_v35, %v575_v34  ;;  %v772_v34 = vld [vmem:[#allocation13 + $0x10] sm:$0xff] }
  0xee   :  { %1431 = vmatpush1.bf16.msra.mxu0 %v1430_v41  ;;  %v1474_v41 = vpack.c.bf16 %v287_v40, %v285_v39  ;;  %v579_v40 = vld [vmem:[#allocation10 + $0xc0] sm:$0xff] }
  0xef   :  { %1433 = vmatprep.subr.bf16.mxu0 %v1432_v42  ;;  %v159_v42 = vld [vmem:[#allocation2 + $0x10] sm:$0xff] }
  0xf2   :  { %1435 = vmatpush1.bf16.msra.mxu0 %v1434_v47  ;;  %v476_v47 = vld [vmem:[#allocation8 + $0xf8] sm:$0xff] }
  0xf3   :  { %1437 = vmatprep.subr.bf16.mxu0 %v1436_v48  ;;  %v1504_v48 = vpack.c.bf16 %v476_v47, %v475_v46  ;;  %v583_v46 = vld [vmem:[#allocation10 + $0xe0] sm:$0xff]  ;;  %v585_v47 = vld [vmem:[#allocation10 + $0xf0] sm:$0xff] }
  0xf5   :  { %1505 = vmatprep.subr.bf16.mxu1 %v1504_v48  ;;  %v1538_v48 = vpack.c.bf16 %v585_v47, %v583_v46 }
  0xf6   :  { %1439 = vmatpush1.bf16.msra.mxu0 %v1438_v53  ;;  %1507 = vmatpush3.bf16.msra.mxu1 %v1506_v51  ;;  %v558_v53 = vld [vmem:[#allocation10 + $0x18] sm:$0xff] }
  0xf7   :  { %1441 = vmatprep.subr.bf16.mxu0 %v1440_v54  ;;  %v1508_v54 = vpack.c.bf16 %v558_v53, %v556_v52  ;;  %v1255_v52 = vld [vmem:[%s2319_s5] ss:$0 sm:$0xff] }
  0xf9   :  { %1509 = vmatprep.subr.bf16.mxu1 %v1508_v54 }
  0xfa   :  { %1443 = vmatpush1.bf16.msra.mxu0 %v1442_v59  ;;  %v2248_v59 = vsub.s32 1, %v2239_v56 }
  0xfb   :  { %1445 = vmatprep.subr.bf16.mxu0 %v1444_v60  ;;  %v294_v60 = vrot.slane %v289_v58, %v2242_v57 }
  0xfc   :  { %v298_v61 = vrot.slane %v289_v58, %v2248_v59  ;;  %v677_v58 = vld [vmem:[#allocation11 + $0x8] sm:$0xff] }
  0xfe   :  { %1447 = vmatpush1.bf16.msra.mxu0 %v1446_v1  ;;  %v555_v1 = vld [vmem:[#allocation10] sm:$0xff] }
  0xff   :  { %1449 = vmatprep.subr.bf16.mxu0 %v1448_v2  ;;  %v557_v2 = vld [vmem:[#allocation10 + $0x10] sm:$0xff] }
 0x102   :  { %1451 = vmatpush1.bf16.msra.mxu0 %v1450_v7  ;;  %v1510_v7 = vpack.c.bf16 %v557_v2, %v555_v1  ;;  %v680_v2 = vld [vmem:[#allocation11 + $0x20] sm:$0xff] }
 0x103   :  { %1453 = vmatprep.subr.bf16.mxu0 %v1452_v8 }
 0x106   :  { %1455 = vmatpush1.bf16.msra.mxu0 %v1454_v13  ;;  %v566_v13 = vld [vmem:[#allocation10 + $0x58] sm:$0xff] }
 0x107   :  { %1457 = vmatprep.subr.bf16.mxu0 %v1456_v14  ;;  %v1514_v14 = vpack.c.bf16 %v561_v11, %v559_v10  ;;  %v1516_v15 = vpack.c.bf16 %v566_v13, %v564_v12  ;;  %v686_v11 = vld [vmem:[#allocation11 + $0x50] sm:$0xff]  ;;  %v687_v12 = vld [vmem:[#allocation11 + $0x58] sm:$0xff] }
 0x108   :  { %v1556_v13 = vpack.c.bf16 %v687_v12, %v686_v11  ;;  %v794_v11 = vld [vmem:[#allocation13 + $0xc0] sm:$0xff]  ;;  %v796_v12 = vld [vmem:[#allocation13 + $0xd0] sm:$0xff] }
 0x10a   :  { %1459 = vmatpush1.bf16.msra.mxu0 %v1458_v19  ;;  %v570_v19 = vld [vmem:[#allocation10 + $0x78] sm:$0xff] }
 0x10b   :  { %1461 = vmatprep.subr.bf16.mxu0 %v1460_v20  ;;  %v1518_v20 = vpack.c.bf16 %v565_v17, %v563_v16  ;;  %v1520_v21 = vpack.c.bf16 %v570_v19, %v568_v18  ;;  %v690_v17 = vld [vmem:[#allocation11 + $0x70] sm:$0xff]  ;;  %v691_v18 = vld [vmem:[#allocation11 + $0x78] sm:$0xff] }
 0x10c   :  { %v1562_v19 = vpack.c.bf16 %v691_v18, %v690_v17  ;;  %v798_v17 = vld [vmem:[#allocation13 + $0xe0] sm:$0xff]  ;;  %v800_v18 = vld [vmem:[#allocation13 + $0xf0] sm:$0xff] }
 0x10e   :  { %1463 = vmatpush1.bf16.msra.mxu0 %v1462_v25  ;;  %v574_v25 = vld [vmem:[#allocation10 + $0x98] sm:$0xff] }
 0x10f   :  { %1465 = vmatprep.subr.bf16.mxu0 %v1464_v26  ;;  %v1522_v26 = vpack.c.bf16 %v569_v23, %v567_v22  ;;  %v1524_v27 = vpack.c.bf16 %v574_v25, %v572_v24  ;;  %v587_v23 = vld [vmem:[%s2321_s7] sm:$0x3] }
 0x110   :  { %v592_v24 = vrot.slane %v587_v23, %v2242_v57  ;;  %v596_v25 = vrot.slane %v587_v23, %v2248_v59 }
 0x112   :  { %1467 = vmatpush1.bf16.msra.mxu0 %v1466_v31  ;;  %v578_v31 = vld [vmem:[#allocation10 + $0xb8] sm:$0xff] }
 0x113   :  { %1469 = vmatprep.subr.bf16.mxu0 %v1468_v32  ;;  %v1526_v32 = vpack.c.bf16 %v573_v29, %v571_v28  ;;  %v1528_v33 = vpack.c.bf16 %v578_v31, %v576_v30 }
 0x116   :  { %1471 = vmatpush1.bf16.msra.mxu0 %v1470_v37  ;;  %v580_v37 = vld [vmem:[#allocation10 + $0xc8] sm:$0xff] }
 0x117   :  { %1473 = vmatprep.subr.bf16.mxu0 %v1472_v38  ;;  %v582_v38 = vld [vmem:[#allocation10 + $0xd8] sm:$0xff] }
 0x118   :  { %v1532_v39 = vpack.c.bf16 %v582_v38, %v580_v37  ;;  %v777_v37 = vld [vmem:[#allocation13 + $0x38] sm:$0xff] }
 0x11a   :  { %1475 = vmatpush1.bf16.msra.mxu0 %v1474_v41  ;;  %v581_v41 = vld [vmem:[#allocation10 + $0xd0] sm:$0xff] }
 0x11d   :  { %437 = vmatmul.mubr.f32.vlgmr.msra.gmra.mrb[0].mxu0 %v159_v42  ;;  %v1534_v42 = vpack.c.bf16 %v581_v41, %v579_v40 }
 0x1f0   :  { %v438_v62 = vpop.f32.mrb[0].mxu0 }
 0x1f1   :  { %v1724_v63 = vadd.f32 %v438_v62, %v294_v60  ;;  %v440_v0 = vpop.f32.mrb[1].mxu0 }
 0x1f2   :  { %v1725_v3 = vadd.f32 %v440_v0, %v298_v61  ;;  %v1541_v61 = vpack.c.bf16 %v677_v58, %v676_v55  ;;  %v679_v0 = vld [vmem:[#allocation11 + $0x18] sm:$0xff]  ;;  %v782_v55 = vld [vmem:[#allocation13 + $0x60] sm:$0xff]  ;;  %v784_v58 = vld [vmem:[#allocation13 + $0x70] sm:$0xff] }
 0x1f3   :  { %v443_v8 = vmax.f32 %v1724_v63, 0.0  ;;  %v678_v63 = vld [vmem:[#allocation11 + $0x10] sm:$0xff] }
 0x1f4   :  { %v444_v6 = vmax.f32 %v1725_v3, 0.0  ;;  %v1544_v1 = vpack.c.bf16 %v679_v0, %v678_v63  ;;  %v681_v3 = vld [vmem:[#allocation11 + $0x28] sm:$0xff]  ;;  %v786_v0 = vld [vmem:[#allocation13 + $0x80] sm:$0xff] }
 0x1f5   :  { %v1547_v4 = vpack.c.bf16 %v681_v3, %v680_v2  ;;  %v793_v2 = vld [vmem:[#allocation13 + $0xb8] sm:$0xff] }
 0x1f6   :  { %548 = vmatprep.mubr.f32.mxu1 %v444_v6  ;;  %v683_v6 = vld [vmem:[#allocation11 + $0x38] sm:$0xff] }
 0x1f7   :  { %549 = vmatmul.mubr.f32.vlgmr.msra.gmra.mrb[0].mxu1 %v443_v8  ;;  %v684_v8 = vld [vmem:[#allocation11 + $0x40] sm:$0xff] }
 0x1f8   :  { %1511 = vmatpush1.bf16.msra.mxu1 %v1510_v7  ;;  %663 = vmatprep.mubr.f32.mxu1 %v2036_v49  ;;  %v1550_v7 = vpack.c.bf16 %v683_v6, %v682_v5  ;;  %v790_v5 = vld [vmem:[#allocation13 + $0xa0] sm:$0xff]  ;;  %v792_v6 = vld [vmem:[#allocation13 + $0xb0] sm:$0xff] }
 0x1f9   :  { %1513 = vmatprep.subr.bf16.mxu1 %v1512_v9  ;;  %v685_v9 = vld [vmem:[#allocation11 + $0x48] sm:$0xff] }
 0x1fa   :  { %v1553_v10 = vpack.c.bf16 %v685_v9, %v684_v8  ;;  %v797_v8 = vld [vmem:[#allocation13 + $0xd8] sm:$0xff]  ;;  %v1586_v9 = vpack.c.bf16 %v792_v6, %v790_v5  ;;  %v948_v5 = vld [vmem:[#allocation14 + $0x1e8] sm:$0xff] }
 0x1fc   :  { %1515 = vmatpush1.bf16.msra.mxu1 %v1514_v14  ;;  %v688_v14 = vld [vmem:[#allocation11 + $0x60] sm:$0xff] }
 0x1fd   :  { %1517 = vmatprep.subr.bf16.mxu1 %v1516_v15  ;;  %v689_v15 = vld [vmem:[#allocation11 + $0x68] sm:$0xff] }
 0x1fe   :  { %v1559_v16 = vpack.c.bf16 %v689_v15, %v688_v14  ;;  %v799_v14 = vld [vmem:[#allocation13 + $0xe8] sm:$0xff]  ;;  %v801_v15 = vld [vmem:[#allocation13 + $0xf8] sm:$0xff] }
 0x200   :  { %1519 = vmatpush1.bf16.msra.mxu1 %v1518_v20  ;;  %v771_v20 = vld [vmem:[#allocation13 + $0x8] sm:$0xff] }
 0x201   :  { %1521 = vmatprep.subr.bf16.mxu1 %v1520_v21  ;;  %v773_v21 = vld [vmem:[#allocation13 + $0x18] sm:$0xff] }
 0x202   :  { %v1564_v22 = vpack.c.bf16 %v773_v21, %v771_v20  ;;  %v888_v20 = vld [vmem:[#allocation14 + $0x8] sm:$0xff] }
 0x203   :  { %v892_v21 = vld [vmem:[#allocation14 + $0x28] sm:$0xff] }
 0x204   :  { %1523 = vmatpush1.bf16.msra.mxu1 %v1522_v26  ;;  %v1596_v23 = vpack.c.bf16 %v892_v21, %v888_v20  ;;  %v963_v20 = vld [vmem:[#allocation14 + $0x260] sm:$0xff] }
 0x205   :  { %1525 = vmatprep.subr.bf16.mxu1 %v1524_v27 }
 0x206   :  { %1597 = vmatprep.subr.bf16.mxu0 %v1596_v23  ;;  %v972_v23 = vld [vmem:[#allocation14 + $0x2a8] sm:$0xff] }
 0x208   :  { %1527 = vmatpush1.bf16.msra.mxu1 %v1526_v32  ;;  %v673_v32 = vld [vmem:[#allocation5] sm:$0xff] }
 0x209   :  { %1529 = vmatprep.subr.bf16.mxu1 %v1528_v33  ;;  %v770_v33 = vld [vmem:[#allocation13] sm:$0xff] }
 0x20c   :  { %1531 = vmatpush1.bf16.msra.mxu1 %v1530_v36  ;;  %v775_v36 = vld [vmem:[#allocation13 + $0x28] sm:$0xff] }
 0x20d   :  { %1533 = vmatprep.subr.bf16.mxu1 %v1532_v39  ;;  %v1566_v39 = vpack.c.bf16 %v772_v34, %v770_v33  ;;  %v1568_v41 = vpack.c.bf16 %v777_v37, %v775_v36  ;;  %v899_v33 = vld [vmem:[#allocation14 + $0x60] sm:$0xff]  ;;  %v908_v36 = vld [vmem:[#allocation14 + $0xa8] sm:$0xff] }
 0x210   :  { %1535 = vmatpush1.bf16.msra.mxu1 %v1534_v42  ;;  %v774_v42 = vld [vmem:[#allocation13 + $0x20] sm:$0xff] }
 0x211   :  { %1537 = vmatprep.subr.bf16.mxu1 %v1536_v45  ;;  %v781_v45 = vld [vmem:[#allocation13 + $0x58] sm:$0xff]  ;;  %v1570_v46 = vpack.c.bf16 %v776_v43, %v774_v42  ;;  %v916_v42 = vld [vmem:[#allocation14 + $0xe8] sm:$0xff] }
 0x212   :  { %v1572_v47 = vpack.c.bf16 %v781_v45, %v779_v44  ;;  %v911_v44 = vld [vmem:[#allocation14 + $0xc0] sm:$0xff] }
 0x213   :  { %v915_v45 = vld [vmem:[#allocation14 + $0xe0] sm:$0xff] }
 0x214   :  { %1539 = vmatpush1.bf16.msra.mxu1 %v1538_v48  ;;  %v778_v48 = vld [vmem:[#allocation13 + $0x40] sm:$0xff] }
 0x215   :  { %1540 = vmatprep.subr.bf16.mxu1 %v2037_v50 }
 0x2ca   :  { %v1293_v51 = vpop.f32.mrb[0].mxu1 }
 0x2cb   :  { %v1294_v53 = vpop.f32.mrb[1].mxu1 }
 0x2cc   :  { %v1295_v54 = vadd.f32 %v1294_v53, %v1293_v51  ;;  %v783_v51 = vld [vmem:[#allocation13 + $0x68] sm:$0xff] }
 0x2ce   :  { %v551_v60 = vadd.f32 %v1295_v54, %v1255_v52  ;;  %v785_v52 = vld [vmem:[#allocation13 + $0x78] sm:$0xff] }
 0x2cf   :  { %v1576_v54 = vpack.c.bf16 %v785_v52, %v783_v51  ;;  %v919_v51 = vld [vmem:[#allocation14 + $0x100] sm:$0xff] }
 0x2d0   :  { %v554_v62 = vmax.f32 %v551_v60, 0.0  ;;  %v787_v60 = vld [vmem:[#allocation13 + $0x88] sm:$0xff]  ;;  %v923_v52 = vld [vmem:[#allocation14 + $0x120] sm:$0xff] }
 0x2d2   :  { %664 = vmatmul.mubr.f32.vlgmr.msra.gmra.mrb[2].mxu1 %v554_v62  ;;  %v1578_v62 = vpack.c.bf16 %v784_v58, %v782_v55  ;;  %v932_v55 = vld [vmem:[#allocation14 + $0x168] sm:$0xff] }
 0x2d3   :  { %1542 = vmatpush3.bf16.msra.mxu1 %v1541_v61  ;;  %1345 = vmatprep.mubr.msk.f32.mxu1 %vm2038_vm0, %v2036_v49  ;;  %v789_v61 = vld [vmem:[#allocation13 + $0x98] sm:$0xff] }
 0x2d4   :  { %1543 = vmatprep.subr.bf16.mxu1 %v2037_v50  ;;  %v1580_v63 = vpack.c.bf16 %v789_v61, %v787_v60  ;;  %v927_v60 = vld [vmem:[#allocation14 + $0x140] sm:$0xff] }
 0x2d5   :  { %v931_v61 = vld [vmem:[#allocation14 + $0x160] sm:$0xff] }
 0x2d7   :  { %1545 = vmatpush3.bf16.msra.mxu1 %v1544_v1  ;;  %v791_v1 = vld [vmem:[#allocation13 + $0xa8] sm:$0xff] }
 0x2d8   :  { %1546 = vmatprep.subr.bf16.mxu1 %v2037_v50 }
 0x2db   :  { %1548 = vmatpush3.bf16.msra.mxu1 %v1547_v4  ;;  %v1584_v4 = vpack.c.bf16 %v793_v2, %v791_v1  ;;  %v935_v1 = vld [vmem:[#allocation14 + $0x180] sm:$0xff] }
 0x2dc   :  { %1549 = vmatprep.subr.bf16.mxu1 %v2037_v50  ;;  %v939_v2 = vld [vmem:[#allocation14 + $0x1a0] sm:$0xff] }
 0x2df   :  { %1551 = vmatpush3.bf16.msra.mxu1 %v1550_v7  ;;  %v795_v7 = vld [vmem:[#allocation13 + $0xc8] sm:$0xff] }
 0x2e0   :  { %1552 = vmatprep.subr.bf16.mxu1 %v2037_v50 }
 0x2e3   :  { %1554 = vmatpush3.bf16.msra.mxu1 %v1553_v10  ;;  %v1588_v10 = vpack.c.bf16 %v797_v8, %v795_v7  ;;  %v943_v7 = vld [vmem:[#allocation14 + $0x1c0] sm:$0xff] }
 0x2e4   :  { %1555 = vmatprep.subr.bf16.mxu1 %v2037_v50  ;;  %v947_v8 = vld [vmem:[#allocation14 + $0x1e0] sm:$0xff] }
 0x2e7   :  { %1557 = vmatpush3.bf16.msra.mxu1 %v1556_v13  ;;  %v1590_v13 = vpack.c.bf16 %v796_v12, %v794_v11  ;;  %v956_v11 = vld [vmem:[#allocation14 + $0x228] sm:$0xff] }
 0x2e8   :  { %1558 = vmatprep.subr.bf16.mxu1 %v2037_v50 }
 0x2eb   :  { %1560 = vmatpush3.bf16.msra.mxu1 %v1559_v16  ;;  %v1592_v16 = vpack.c.bf16 %v801_v15, %v799_v14  ;;  %v955_v14 = vld [vmem:[#allocation14 + $0x220] sm:$0xff] }
 0x2ec   :  { %1561 = vmatprep.subr.bf16.mxu1 %v2037_v50  ;;  %v780_v50 = vld [vmem:[#allocation13 + $0x50] sm:$0xff] }
 0x2ed   :  { %v1574_v53 = vpack.c.bf16 %v780_v50, %v778_v48  ;;  %v924_v48 = vld [vmem:[#allocation14 + $0x128] sm:$0xff] }
 0x2ef   :  { %1563 = vmatpush3.bf16.msra.mxu1 %v1562_v19  ;;  %v1594_v19 = vpack.c.bf16 %v800_v18, %v798_v17  ;;  %v964_v17 = vld [vmem:[#allocation14 + $0x268] sm:$0xff] }
 0x2f0   :  { %1565 = vmatprep.subr.bf16.mxu1 %v1564_v22  ;;  %v890_v22 = vld [vmem:[#allocation14 + $0x18] sm:$0xff] }
 0x3a5   :  { %v665_v26 = vpop.f32.mrb[2].mxu1 }
 0x3a6   :  { %v666_v27 = vadd.f32 %v665_v26, %v592_v24  ;;  %v667_v28 = vpop.f32.mrb[3].mxu1  ;;  %v894_v24 = vld [vmem:[#allocation14 + $0x38] sm:$0xff]  ;;  %v891_v26 = vld [vmem:[#allocation14 + $0x20] sm:$0xff] }
 0x3a7   :  { %v668_v29 = vadd.f32 %v667_v28, %v596_v25  ;;  %v887_v25 = vld [vmem:[#allocation14] sm:$0xff] }
 0x3a8   :  { %1207 = vst [vmem:[#allocation17] sm:$0xff] %v666_v27  ;;  %v1598_v28 = vpack.c.bf16 %v891_v26, %v887_v25  ;;  %v967_v25 = vld [vmem:[#allocation14 + $0x280] sm:$0xff] }
 0x3a9   :  { %v670_v30 = vmul.f32 0.5, %v668_v29  ;;  %1208 = vst [vmem:[#allocation19] sm:$0xff] %v668_v29  ;;  %v896_v29 = vld [vmem:[#allocation14 + $0x48] sm:$0xff]  ;;  %v971_v26 = vld [vmem:[#allocation14 + $0x2a0] sm:$0xff] }
 0x3aa   :  { %1599 = vmatpush1.bf16.msra.mxu0 %v1598_v28  ;;  %v976_v28 = vld [vmem:[#allocation14 + $0x2c8] sm:$0xff] }
 0x3ab   :  { %v671_v31 = vmul.f32 1.442695, %v670_v30  ;;  %v900_v30 = vld [vmem:[#allocation14 + $0x68] sm:$0xff] }
 0x3ad   :  { %1748 = vpow2.f32 %v671_v31  ;;  %v1600_v31 = vpack.c.bf16 %v900_v30, %v896_v29  ;;  %v980_v29 = vld [vmem:[#allocation14 + $0x2e8] sm:$0xff] }
 0x3ae   :  { %v1640_v30 = vpack.c.bf16 %v980_v29, %v976_v28  ;;  %v937_v29 = vld [vmem:[#allocation14 + $0x190] sm:$0xff] }
 0x3af   :  { %1601 = vmatprep.subr.bf16.mxu0 %v1600_v31  ;;  %v975_v31 = vld [vmem:[#allocation14 + $0x2c0] sm:$0xff] }
 0x3b7   :  { %v1749_v35 = vpop.eup %1748 }
 0x3b8   :  { %v674_v38 = vmul.f32 %v1749_v35, %v673_v32  ;;  %v895_v32 = vld [vmem:[#allocation14 + $0x40] sm:$0xff]  ;;  %v904_v35 = vld [vmem:[#allocation14 + $0x88] sm:$0xff] }
 0x3b9   :  { %v1602_v34 = vpack.c.bf16 %v899_v33, %v895_v32  ;;  %v1604_v37 = vpack.c.bf16 %v908_v36, %v904_v35  ;;  %v979_v32 = vld [vmem:[#allocation14 + $0x2e0] sm:$0xff]  ;;  %v988_v35 = vld [vmem:[#allocation14 + $0x328] sm:$0xff] }
 0x3ba   :  { %v675_v40 = vadd.f32 %v674_v38, %v666_v27  ;;  %v1660_v27 = vpack.c.bf16 %v894_v24, %v890_v22  ;;  %v903_v38 = vld [vmem:[#allocation14 + $0x80] sm:$0xff]  ;;  %v968_v22 = vld [vmem:[#allocation14 + $0x288] sm:$0xff]  ;;  %v1642_v33 = vpack.c.bf16 %v979_v32, %v975_v31  ;;  %v946_v31 = vld [vmem:[#allocation14 + $0x1d8] sm:$0xff] }
 0x3bb   :  { %1603 = vmatpush1.bf16.msra.mxu0 %v1602_v34  ;;  %v1636_v24 = vpack.c.bf16 %v972_v23, %v968_v22  ;;  %v984_v34 = vld [vmem:[#allocation14 + $0x308] sm:$0xff]  ;;  %v929_v23 = vld [vmem:[#allocation14 + $0x150] sm:$0xff]  ;;  %v950_v32 = vld [vmem:[#allocation14 + $0x1f8] sm:$0xff] }
 0x3bc   :  { %1346 = vmatmul.mubr.f32.vlgmr.msra.gmra.mrb[4].mxu1 %v675_v40  ;;  %1605 = vmatprep.subr.bf16.mxu0 %v1604_v37  ;;  %v1644_v36 = vpack.c.bf16 %v988_v35, %v984_v34  ;;  %v983_v37 = vld [vmem:[#allocation14 + $0x300] sm:$0xff]  ;;  %v1688_v34 = vpack.c.bf16 %v950_v32, %v946_v31  ;;  %v945_v35 = vld [vmem:[#allocation14 + $0x1d0] sm:$0xff] }
 0x3bd   :  { %1567 = vmatpush1.bf16.msra.mxu1 %v1566_v39  ;;  %878 = vmatprep.mubr.f32.mxu1 %v2036_v49  ;;  %v788_v49 = vld [vmem:[#allocation13 + $0x90] sm:$0xff]  ;;  %v907_v39 = vld [vmem:[#allocation14 + $0xa0] sm:$0xff] }
 0x3be   :  { %1569 = vmatprep.subr.bf16.mxu1 %v1568_v41  ;;  %v1582_v3 = vpack.c.bf16 %v788_v49, %v786_v0  ;;  %v1606_v40 = vpack.c.bf16 %v907_v39, %v903_v38  ;;  %v912_v41 = vld [vmem:[#allocation14 + $0xc8] sm:$0xff]  ;;  %v987_v38 = vld [vmem:[#allocation14 + $0x320] sm:$0xff]  ;;  %v1009_v31 = vld [vmem:[#allocation14 + $0x3d0] sm:$0xff] }
 0x3bf   :  { %v1608_v43 = vpack.c.bf16 %v916_v42, %v912_v41  ;;  %v940_v0 = vld [vmem:[#allocation14 + $0x1a8] sm:$0xff]  ;;  %v1646_v39 = vpack.c.bf16 %v987_v38, %v983_v37  ;;  %v954_v37 = vld [vmem:[#allocation14 + $0x218] sm:$0xff]  ;;  %v1013_v32 = vld [vmem:[#allocation14 + $0x3f0] sm:$0xff] }
 0x3c0   :  { %1607 = vmatpush1.bf16.msra.mxu0 %v1606_v40  ;;  %v992_v40 = vld [vmem:[#allocation14 + $0x348] sm:$0xff]  ;;  %v958_v38 = vld [vmem:[#allocation14 + $0x238] sm:$0xff] }
 0x3c1   :  { %1571 = vmatpush1.bf16.msra.mxu1 %v1570_v46  ;;  %v1610_v46 = vpack.c.bf16 %v915_v45, %v911_v44  ;;  %1609 = vmatprep.subr.bf16.mxu0 %v1608_v43  ;;  %v996_v41 = vld [vmem:[#allocation14 + $0x368] sm:$0xff]  ;;  %v991_v43 = vld [vmem:[#allocation14 + $0x340] sm:$0xff] }
 0x3c2   :  { %1573 = vmatprep.subr.bf16.mxu1 %v1572_v47  ;;  %v920_v47 = vld [vmem:[#allocation14 + $0x108] sm:$0xff]  ;;  %v1648_v42 = vpack.c.bf16 %v996_v41, %v992_v40  ;;  %v995_v44 = vld [vmem:[#allocation14 + $0x360] sm:$0xff]  ;;  %v1692_v40 = vpack.c.bf16 %v958_v38, %v954_v37  ;;  %v953_v41 = vld [vmem:[#allocation14 + $0x210] sm:$0xff] }
 0x3c3   :  { %v1612_v50 = vpack.c.bf16 %v924_v48, %v920_v47  ;;  %v1650_v45 = vpack.c.bf16 %v995_v44, %v991_v43  ;;  %v1004_v47 = vld [vmem:[#allocation14 + $0x3a8] sm:$0xff]  ;;  %v962_v43 = vld [vmem:[#allocation14 + $0x258] sm:$0xff] }
 0x3c4   :  { %1611 = vmatpush1.bf16.msra.mxu0 %v1610_v46  ;;  %v1000_v46 = vld [vmem:[#allocation14 + $0x388] sm:$0xff]  ;;  %v966_v44 = vld [vmem:[#allocation14 + $0x278] sm:$0xff] }
 0x3c5   :  { %1575 = vmatpush1.bf16.msra.mxu1 %v1574_v53  ;;  %v1614_v53 = vpack.c.bf16 %v923_v52, %v919_v51  ;;  %1613 = vmatprep.subr.bf16.mxu0 %v1612_v50  ;;  %v1652_v48 = vpack.c.bf16 %v1004_v47, %v1000_v46  ;;  %v1256_v50 = vld [vmem:[%s2323_s9] ss:$0 sm:$0xff]  ;;  %v889_v51 = vld [vmem:[#allocation14 + $0x10] sm:$0xff]  ;;  %v1696_v46 = vpack.c.bf16 %v966_v44, %v962_v43 }
 0x3c6   :  { %1577 = vmatprep.subr.bf16.mxu1 %v1576_v54  ;;  %v928_v54 = vld [vmem:[#allocation14 + $0x148] sm:$0xff]  ;;  %v893_v52 = vld [vmem:[#allocation14 + $0x30] sm:$0xff] }
 0x3c7   :  { %v1616_v58 = vpack.c.bf16 %v932_v55, %v928_v54  ;;  %v898_v54 = vld [vmem:[#allocation14 + $0x58] sm:$0xff]  ;;  %v961_v47 = vld [vmem:[#allocation14 + $0x250] sm:$0xff] }
 0x3c8   :  { %1615 = vmatpush1.bf16.msra.mxu0 %v1614_v53  ;;  %v902_v55 = vld [vmem:[#allocation14 + $0x78] sm:$0xff] }
 0x3c9   :  { %1579 = vmatpush1.bf16.msra.mxu1 %v1578_v62  ;;  %v1618_v62 = vpack.c.bf16 %v931_v61, %v927_v60  ;;  %1617 = vmatprep.subr.bf16.mxu0 %v1616_v58  ;;  %v1662_v61 = vpack.c.bf16 %v893_v52, %v889_v51  ;;  %v974_v51 = vld [vmem:[#allocation14 + $0x2b8] sm:$0xff] }
 0x3ca   :  { %1581 = vmatprep.subr.bf16.mxu1 %v1580_v63  ;;  %v936_v63 = vld [vmem:[#allocation14 + $0x188] sm:$0xff] }
 0x3cb   :  { %v1620_v49 = vpack.c.bf16 %v940_v0, %v936_v63  ;;  %v1664_v63 = vpack.c.bf16 %v902_v55, %v898_v54  ;;  %v897_v0 = vld [vmem:[#allocation14 + $0x50] sm:$0xff] }
 0x3cc   :  { %1619 = vmatpush1.bf16.msra.mxu0 %v1618_v62  ;;  %v969_v54 = vld [vmem:[#allocation14 + $0x290] sm:$0xff] }
 0x3cd   :  { %1583 = vmatpush1.bf16.msra.mxu1 %v1582_v3  ;;  %v1622_v3 = vpack.c.bf16 %v939_v2, %v935_v1  ;;  %1621 = vmatprep.subr.bf16.mxu0 %v1620_v49  ;;  %v901_v49 = vld [vmem:[#allocation14 + $0x70] sm:$0xff]  ;;  %v906_v1 = vld [vmem:[#allocation14 + $0x98] sm:$0xff] }
 0x3ce   :  { %1585 = vmatprep.subr.bf16.mxu1 %v1584_v4  ;;  %v944_v4 = vld [vmem:[#allocation14 + $0x1c8] sm:$0xff]  ;;  %v910_v2 = vld [vmem:[#allocation14 + $0xb8] sm:$0xff]  ;;  %v973_v55 = vld [vmem:[#allocation14 + $0x2b0] sm:$0xff] }
 0x3cf   :  { %v1624_v6 = vpack.c.bf16 %v948_v5, %v944_v4  ;;  %v1668_v4 = vpack.c.bf16 %v910_v2, %v906_v1  ;;  %v905_v5 = vld [vmem:[#allocation14 + $0x90] sm:$0xff]  ;;  %v990_v1 = vld [vmem:[#allocation14 + $0x338] sm:$0xff] }
 0x3d0   :  { %1623 = vmatpush1.bf16.msra.mxu0 %v1622_v3  ;;  %v1666_v3 = vpack.c.bf16 %v901_v49, %v897_v0  ;;  %v981_v0 = vld [vmem:[#allocation14 + $0x2f0] sm:$0xff]  ;;  %v986_v49 = vld [vmem:[#allocation14 + $0x318] sm:$0xff] }
 0x3d1   :  { %1587 = vmatpush1.bf16.msra.mxu1 %v1586_v9  ;;  %v1626_v9 = vpack.c.bf16 %v947_v8, %v943_v7  ;;  %1625 = vmatprep.subr.bf16.mxu0 %v1624_v6  ;;  %v909_v6 = vld [vmem:[#allocation14 + $0xb0] sm:$0xff]  ;;  %v914_v7 = vld [vmem:[#allocation14 + $0xd8] sm:$0xff] }
 0x3d2   :  { %1589 = vmatprep.subr.bf16.mxu1 %v1588_v10  ;;  %v952_v10 = vld [vmem:[#allocation14 + $0x208] sm:$0xff]  ;;  %v918_v8 = vld [vmem:[#allocation14 + $0xf8] sm:$0xff] }
 0x3d3   :  { %v1628_v12 = vpack.c.bf16 %v956_v11, %v952_v10  ;;  %v1672_v10 = vpack.c.bf16 %v918_v8, %v914_v7  ;;  %v913_v11 = vld [vmem:[#allocation14 + $0xd0] sm:$0xff]  ;;  %v998_v7 = vld [vmem:[#allocation14 + $0x378] sm:$0xff] }
 0x3d4   :  { %1627 = vmatpush1.bf16.msra.mxu0 %v1626_v9  ;;  %v1670_v9 = vpack.c.bf16 %v909_v6, %v905_v5  ;;  %v989_v5 = vld [vmem:[#allocation14 + $0x330] sm:$0xff]  ;;  %v994_v6 = vld [vmem:[#allocation14 + $0x358] sm:$0xff] }
 0x3d5   :  { %1591 = vmatpush1.bf16.msra.mxu1 %v1590_v13  ;;  %v951_v13 = vld [vmem:[#allocation14 + $0x200] sm:$0xff]  ;;  %1629 = vmatprep.subr.bf16.mxu0 %v1628_v12  ;;  %v917_v12 = vld [vmem:[#allocation14 + $0xf0] sm:$0xff] }
 0x3d6   :  { %1593 = vmatprep.subr.bf16.mxu1 %v1592_v16  ;;  %v1630_v15 = vpack.c.bf16 %v955_v14, %v951_v13  ;;  %v960_v16 = vld [vmem:[#allocation14 + $0x248] sm:$0xff]  ;;  %v922_v13 = vld [vmem:[#allocation14 + $0x118] sm:$0xff] }
 0x3d7   :  { %v1632_v18 = vpack.c.bf16 %v964_v17, %v960_v16  ;;  %v926_v14 = vld [vmem:[#allocation14 + $0x138] sm:$0xff]  ;;  %v921_v17 = vld [vmem:[#allocation14 + $0x110] sm:$0xff] }
 0x3d8   :  { %1631 = vmatpush1.bf16.msra.mxu0 %v1630_v15  ;;  %v1674_v15 = vpack.c.bf16 %v917_v12, %v913_v11  ;;  %v1676_v16 = vpack.c.bf16 %v926_v14, %v922_v13  ;;  %v997_v11 = vld [vmem:[#allocation14 + $0x370] sm:$0xff]  ;;  %v1002_v12 = vld [vmem:[#allocation14 + $0x398] sm:$0xff] }
 0x3d9   :  { %1595 = vmatpush1.bf16.msra.mxu1 %v1594_v19  ;;  %v959_v19 = vld [vmem:[#allocation14 + $0x240] sm:$0xff]  ;;  %1633 = vmatprep.subr.bf16.mxu0 %v1632_v18  ;;  %v925_v18 = vld [vmem:[#allocation14 + $0x130] sm:$0xff]  ;;  %v1006_v13 = vld [vmem:[#allocation14 + $0x3b8] sm:$0xff] }
 0x3da   :  { %1661 = vmatprep.subr.bf16.mxu1 %v1660_v27  ;;  %v1634_v21 = vpack.c.bf16 %v963_v20, %v959_v19  ;;  %v1638_v27 = vpack.c.bf16 %v971_v26, %v967_v25  ;;  %v930_v19 = vld [vmem:[#allocation14 + $0x158] sm:$0xff] }
 0x3db   :  { %v934_v20 = vld [vmem:[#allocation14 + $0x178] sm:$0xff] }
 0x3dc   :  { %1635 = vmatpush1.bf16.msra.mxu0 %v1634_v21  ;;  %v1678_v21 = vpack.c.bf16 %v925_v18, %v921_v17  ;;  %v1680_v22 = vpack.c.bf16 %v934_v20, %v930_v19  ;;  %v938_v25 = vld [vmem:[#allocation14 + $0x198] sm:$0xff]  ;;  %v1003_v17 = vld [vmem:[#allocation14 + $0x3a0] sm:$0xff]  ;;  %v1001_v18 = vld [vmem:[#allocation14 + $0x390] sm:$0xff] }
 0x3dd   :  { %1637 = vmatprep.subr.bf16.mxu0 %v1636_v24  ;;  %v933_v24 = vld [vmem:[#allocation14 + $0x170] sm:$0xff]  ;;  %v942_v26 = vld [vmem:[#allocation14 + $0x1b8] sm:$0xff] }
 0x3de   :  { %v1684_v28 = vpack.c.bf16 %v942_v26, %v938_v25  ;;  %v1005_v20 = vld [vmem:[#allocation14 + $0x3b0] sm:$0xff]  ;;  %v1014_v26 = vld [vmem:[#allocation14 + $0x3f8] sm:$0xff] }
 0x3e0   :  { %1639 = vmatpush1.bf16.msra.mxu0 %v1638_v27  ;;  %v1682_v27 = vpack.c.bf16 %v933_v24, %v929_v23  ;;  %v1012_v23 = vld [vmem:[#allocation14 + $0x3e8] sm:$0xff]  ;;  %v1010_v24 = vld [vmem:[#allocation14 + $0x3d8] sm:$0xff] }
 0x3e1   :  { %1641 = vmatprep.subr.bf16.mxu0 %v1640_v30  ;;  %v941_v30 = vld [vmem:[#allocation14 + $0x1b0] sm:$0xff] }
 0x3e4   :  { %1643 = vmatpush1.bf16.msra.mxu0 %v1642_v33  ;;  %v1686_v33 = vpack.c.bf16 %v941_v30, %v937_v29  ;;  %v1720_v29 = vpack.c.bf16 %v1014_v26, %v1010_v24 }
 0x3e5   :  { %1645 = vmatprep.subr.bf16.mxu0 %v1644_v36  ;;  %v949_v36 = vld [vmem:[#allocation14 + $0x1f0] sm:$0xff] }
 0x3e8   :  { %1647 = vmatpush1.bf16.msra.mxu0 %v1646_v39  ;;  %v1690_v39 = vpack.c.bf16 %v949_v36, %v945_v35 }
 0x3e9   :  { %1649 = vmatprep.subr.bf16.mxu0 %v1648_v42  ;;  %v957_v42 = vld [vmem:[#allocation14 + $0x230] sm:$0xff] }
 0x3ec   :  { %1651 = vmatpush1.bf16.msra.mxu0 %v1650_v45  ;;  %v1694_v45 = vpack.c.bf16 %v957_v42, %v953_v41 }
 0x3ed   :  { %1653 = vmatprep.subr.bf16.mxu0 %v1652_v48  ;;  %v965_v48 = vld [vmem:[#allocation14 + $0x270] sm:$0xff] }
 0x3ee   :  { %v1698_v52 = vpack.c.bf16 %v965_v48, %v961_v47 }
 0x48f   :  { %v765_v53 = vpop.f32.mrb[4].mxu1 }
 0x490   :  { %v766_v58 = vadd.f32 %v1256_v50, %v765_v53  ;;  %v1347_v60 = vpop.f32.mrb[5].mxu1  ;;  %v970_v50 = vld [vmem:[#allocation14 + $0x298] sm:$0xff] }
 0x491   :  { %v1700_v53 = vpack.c.bf16 %v974_v51, %v970_v50  ;;  %v982_v60 = vld [vmem:[#allocation14 + $0x2f8] sm:$0xff] }
 0x492   :  { %v769_v62 = vmax.f32 %v766_v58, 0.0  ;;  %v978_v58 = vld [vmem:[#allocation14 + $0x2d8] sm:$0xff] }
 0x494   :  { %879 = vmatmul.mubr.f32.vlgmr.msra.gmra.mrb[6].mxu1 %v769_v62  ;;  %v1704_v62 = vpack.c.bf16 %v982_v60, %v978_v58 }
 0x495   :  { %1663 = vmatpush1.bf16.msra.mxu1 %v1662_v61  ;;  %v1702_v61 = vpack.c.bf16 %v973_v55, %v969_v54 }
 0x496   :  { %1665 = vmatprep.subr.bf16.mxu1 %v1664_v63  ;;  %v977_v63 = vld [vmem:[#allocation14 + $0x2d0] sm:$0xff] }
 0x497   :  { %v1706_v2 = vpack.c.bf16 %v981_v0, %v977_v63 }
 0x499   :  { %1667 = vmatpush1.bf16.msra.mxu1 %v1666_v3  ;;  %v1708_v3 = vpack.c.bf16 %v990_v1, %v986_v49 }
 0x49a   :  { %1669 = vmatprep.subr.bf16.mxu1 %v1668_v4  ;;  %v985_v4 = vld [vmem:[#allocation14 + $0x310] sm:$0xff] }
 0x49b   :  { %v1710_v8 = vpack.c.bf16 %v989_v5, %v985_v4 }
 0x49d   :  { %1671 = vmatpush1.bf16.msra.mxu1 %v1670_v9  ;;  %v1712_v9 = vpack.c.bf16 %v998_v7, %v994_v6 }
 0x49e   :  { %1673 = vmatprep.subr.bf16.mxu1 %v1672_v10  ;;  %v993_v10 = vld [vmem:[#allocation14 + $0x350] sm:$0xff] }
 0x49f   :  { %v1714_v14 = vpack.c.bf16 %v997_v11, %v993_v10 }
 0x4a1   :  { %1675 = vmatpush1.bf16.msra.mxu1 %v1674_v15  ;;  %v1716_v15 = vpack.c.bf16 %v1006_v13, %v1002_v12 }
 0x4a2   :  { %1677 = vmatprep.subr.bf16.mxu1 %v1676_v16  ;;  %v999_v16 = vld [vmem:[#allocation14 + $0x380] sm:$0xff] }
 0x4a3   :  { %v1654_v19 = vpack.c.bf16 %v1003_v17, %v999_v16 }
 0x4a5   :  { %1679 = vmatpush1.bf16.msra.mxu1 %v1678_v21  ;;  %v1718_v21 = vpack.c.bf16 %v1005_v20, %v1001_v18  ;;  %1655 = vmatpush1.bf16.msra.mxu0 %v1654_v19 }
 0x4a6   :  { %1681 = vmatprep.subr.bf16.mxu1 %v1680_v22  ;;  %v1008_v22 = vld [vmem:[#allocation14 + $0x3c8] sm:$0xff] }
 0x4a7   :  { %v1656_v25 = vpack.c.bf16 %v1012_v23, %v1008_v22 }
 0x4a9   :  { %1683 = vmatpush1.bf16.msra.mxu1 %v1682_v27  ;;  %v1007_v27 = vld [vmem:[#allocation14 + $0x3c0] sm:$0xff]  ;;  %1657 = vmatprep.subr.bf16.mxu0 %v1656_v25 }
 0x4aa   :  { %1685 = vmatprep.subr.bf16.mxu1 %v1684_v28  ;;  %v1011_v28 = vld [vmem:[#allocation14 + $0x3e0] sm:$0xff] }
 0x4ab   :  { %v1658_v30 = vpack.c.bf16 %v1011_v28, %v1007_v27 }
 0x4ad   :  { %1687 = vmatpush1.bf16.msra.mxu1 %v1686_v33  ;;  %v1722_v33 = vpack.c.bf16 %v1013_v32, %v1009_v31  ;;  %1659 = vmatpush1.bf16.msra.mxu0 %v1658_v30 }
 0x4ae   :  { %1689 = vmatprep.subr.bf16.mxu1 %v1688_v34  ;;  %v802_v34 = vld [vmem:[%s2325_s11] sm:$0x3] }
 0x4af   :  { %v807_v35 = vrot.slane %v802_v34, %v2242_v57  ;;  %v811_v36 = vrot.slane %v802_v34, %v2248_v59 }
 0x4b1   :  { %1691 = vmatpush1.bf16.msra.mxu1 %v1690_v39 }
 0x4b2   :  { %1693 = vmatprep.subr.bf16.mxu1 %v1692_v40 }
 0x4b5   :  { %1695 = vmatpush1.bf16.msra.mxu1 %v1694_v45 }
 0x4b6   :  { %1697 = vmatprep.subr.bf16.mxu1 %v1696_v46 }
 0x4b9   :  { %1699 = vmatpush1.bf16.msra.mxu1 %v1698_v52 }
 0x4ba   :  { %1701 = vmatprep.subr.bf16.mxu1 %v1700_v53 }
 0x4bd   :  { %1703 = vmatpush1.bf16.msra.mxu1 %v1702_v61 }
 0x4be   :  { %1705 = vmatprep.subr.bf16.mxu1 %v1704_v62 }
 0x4c1   :  { %1707 = vmatpush1.bf16.msra.mxu1 %v1706_v2 }
 0x4c2   :  { %1709 = vmatprep.subr.bf16.mxu1 %v1708_v3 }
 0x4c5   :  { %1711 = vmatpush1.bf16.msra.mxu1 %v1710_v8 }
 0x4c6   :  { %1713 = vmatprep.subr.bf16.mxu1 %v1712_v9 }
 0x4c9   :  { %1715 = vmatpush1.bf16.msra.mxu1 %v1714_v14 }
 0x4ca   :  { %1717 = vmatprep.subr.bf16.mxu1 %v1716_v15 }
 0x4cd   :  { %1719 = vmatpush1.bf16.msra.mxu1 %v1718_v21 }
 0x4ce   :  { %1721 = vmatprep.subr.bf16.mxu1 %v1720_v29 }
 0x4d1   :  { %1723 = vmatpush1.bf16.msra.mxu1 %v1722_v33 }
 0x567   :  { %v880_v37 = vpop.f32.mrb[6].mxu1 }
 0x568   :  { %v881_v38 = vadd.f32 %v880_v37, %v807_v35  ;;  %v882_v39 = vpop.f32.mrb[7].mxu1 }
 0x569   :  { %v883_v40 = vadd.f32 %v882_v39, %v811_v36 }
 0x56a   :  { %v885_v42 = vmax.f32 %v881_v38, 0.0 }
 0x56b   :  { %v886_v41 = vmax.f32 %v883_v40, 0.0 }
 0x56d   :  { %1101 = vmatprep.mubr.f32.mxu0 %v886_v41  ;;  %1172 = vmatprep.mubr.f32.mxu1 %v886_v41 }
 0x56e   :  { %1102 = vmatmul.mubr.f32.vlgmr.msra.gmra.mrb[2].mxu0 %v885_v42  ;;  %1173 = vmatmul.mubr.f32.vlgmr.msra.gmra.mrb[8].mxu1 %v885_v42 }
 0x56f   :  { %1953 = shalt.err (!%p1950_p12)
}
 0x570   :  { %s1954_s0 = scalar_lea.hbm %s2329_s15, 128 }
 0x571   :  { %p1955_p13 = scmp.ne.s32.totalorder %s2329_s15, %s1954_s0  ;;  %p1958_p0 = scmp.lt.u32.totalorder %s1954_s0, %s2329_s15 }
 0x573   :  { %p1960_p1 = pnand %p1958_p0, %p1955_p13 }
 0x575   :  { %1963 = shalt.err (!%p1960_p1)
}
 0x576   :  { %1228 = dma.vmem_to_hbm [thread:$0]  %s1226_s28, 128, %s2329_s15, [#allocation18]  }
 0x577   :  { %s2040_s25 = smov [#allocation19]  }
 0x578   :  { %s1235_s10 = sshll.u32 %s2040_s25, 4  ;;  %s1236_s10 = int_to_ptr.vmem [resolvable:$true] %s1235_s10 }
 0x579   :  { %s1964_s20 = scalar_lea.vmem %s1236_s10, 128  ;;  %p1969_p3 = scmp.lt.s32.totalorder %s1236_s10, %s1236_s10 }
 0x57a   :  { %p1965_p2 = scmp.ne.s32.totalorder %s1236_s10, %s1964_s20  ;;  %p1970_p4 = scmp.lt.s32.totalorder %s1964_s20, %s1964_s20 }
 0x57c   :  { %p1971_p5 = por %p1970_p4, %p1969_p3 }
 0x57e   :  { %p1972_p6 = pnand %p1971_p5, %p1965_p2 }
 0x580   :  { %1975 = shalt.err (!%p1972_p6)
}
 0x581   :  { %s1976_s12 = scalar_lea.hbm %s2330_s16, 128 }
 0x582   :  { %p1977_p7 = scmp.ne.s32.totalorder %s2330_s16, %s1976_s12  ;;  %p1980_p8 = scmp.lt.u32.totalorder %s1976_s12, %s2330_s16 }
 0x584   :  { %p1982_p9 = pnand %p1980_p8, %p1977_p7 }
 0x586   :  { %1985 = shalt.err (!%p1982_p9)
}
 0x587   :  { %1238 = dma.vmem_to_hbm [thread:$0]  %s1236_s10, 128, %s2330_s16, [#allocation18]   ;;  %v1027_v43 = vsub.s32 2, %v2239_v56  ;;  %v1015_v44 = vld [vmem:[%s2327_s13] sm:$0xf]  ;;  %v1031_v45 = vsub.s32 3, %v2239_v56 }
 0x588   :  { %v1020_v46 = vrot.slane %v1015_v44, %v2242_v57  ;;  %v1024_v48 = vrot.slane %v1015_v44, %v2248_v59  ;;  %s2041_s13 = smov [#allocation16]  }
 0x589   :  { %v1028_v47 = vrot.slane %v1015_v44, %v1027_v43  ;;  %v1032_v50 = vrot.slane %v1015_v44, %v1031_v45  ;;  %s1215_s16 = sshll.u32 %s2041_s13, 4  ;;  %s1216_s16 = int_to_ptr.vmem [resolvable:$true] %s1215_s16 }
 0x58a   :  { %s1986_s9 = scalar_lea.vmem %s1216_s16, 512  ;;  %p1991_p11 = scmp.lt.s32.totalorder %s1216_s16, %s1216_s16 }
 0x58b   :  { %p1987_p10 = scmp.ne.s32.totalorder %s1216_s16, %s1986_s9  ;;  %p1992_p12 = scmp.lt.s32.totalorder %s1986_s9, %s1986_s9 }
 0x58d   :  { %p1993_p13 = por %p1992_p12, %p1991_p11 }
 0x58f   :  { %p1994_p0 = pnand %p1993_p13, %p1987_p10 }
 0x641   :  { %v1103_v51 = vpop.f32.mrb[2].mxu0  ;;  %v1174_v52 = vpop.f32.mrb[8].mxu1 }
 0x642   :  { %v1104_v53 = vadd.f32 %v1103_v51, %v1020_v46  ;;  %v1175_v54 = vadd.f32 %v1174_v52, %v1028_v47  ;;  %v1105_v55 = vpop.f32.mrb[3].mxu0  ;;  %v1176_v58 = vpop.f32.mrb[9].mxu1 }
 0x643   :  { %v1106_v60 = vadd.f32 %v1105_v55, %v1024_v48  ;;  %v1177_v61 = vadd.f32 %v1176_v58, %v1032_v50 }
 0x644   :  { %v1257_v62 = vmul.f32 -1.442695, %v1104_v53  ;;  %v1259_v63 = vmul.f32 -1.442695, %v1175_v54 }
 0x645   :  { %v1258_v0 = vmul.f32 -1.442695, %v1106_v60  ;;  %v1260_v49 = vmul.f32 -1.442695, %v1177_v61 }
 0x646   :  { %1750 = vpow2.f32 %v1257_v62 }
 0x647   :  { %1752 = vpow2.f32 %v1259_v63 }
 0x648   :  { %1754 = vpow2.f32 %v1258_v0 }
 0x649   :  { %1756 = vpow2.f32 %v1260_v49 }
 0x650   :  { %v1751_v56 = vpop.eup %1750 }
 0x651   :  { %v1753_v57 = vpop.eup %1752  ;;  %v1191_v59 = vadd.f32 1.0, %v1751_v56 }
 0x652   :  { %v1755_v1 = vpop.eup %1754  ;;  %v1193_v2 = vadd.f32 1.0, %v1753_v57 }
 0x653   :  { %v1757_v3 = vpop.eup %1756  ;;  %1758 = vrcp.f32 %v1191_v59  ;;  %v1192_v4 = vadd.f32 1.0, %v1755_v1 }
 0x654   :  { %1760 = vrcp.f32 %v1193_v2  ;;  %v1194_v5 = vadd.f32 1.0, %v1757_v3 }
 0x655   :  { %1762 = vrcp.f32 %v1192_v4 }
 0x656   :  { %1764 = vrcp.f32 %v1194_v5 }
 0x65d   :  { %v1759_v6 = vpop.eup %1758 }
 0x65e   :  { %v1761_v7 = vpop.eup %1760  ;;  %1203 = vst [vmem:[#allocation16] sm:$0xff] %v1759_v6 }
 0x65f   :  { %v1763_v8 = vpop.eup %1762  ;;  %1205 = vst [vmem:[#allocation16 + $0x10] sm:$0xff] %v1761_v7 }
 0x660   :  { %v1765_v9 = vpop.eup %1764  ;;  %1204 = vst [vmem:[#allocation16 + $0x8] sm:$0xff] %v1763_v8 }
 0x661   :  { %1206 = vst [vmem:[#allocation16 + $0x18] sm:$0xff] %v1765_v9 }
 0x662   :  { %1997 = shalt.err (!%p1994_p0)
}
 0x663   :  { %s1998_s28 = scalar_lea.hbm %s2328_s14, 512 }
 0x664   :  { %p1999_p1 = scmp.ne.s32.totalorder %s2328_s14, %s1998_s28  ;;  %p2002_p2 = scmp.lt.u32.totalorder %s1998_s28, %s2328_s14 }
 0x666   :  { %p2004_p3 = pnand %p2002_p2, %p1999_p1 }
 0x668   :  { %2007 = shalt.err (!%p2004_p3)
}
 0x669   :  { %1218 = dma.vmem_to_hbm [thread:$0]  %s1216_s16, 512, %s2328_s14, [#allocation4]  }
 0x66a   :  { %2018 = dma.done.wait [#allocation4], 512  }
 0x66b   :  { %2019 = vsyncadd [#allocation4], 4294966784 }
 0x66c   :  { %2020 = dma.done.wait [#allocation18], 256  }
 0x66d   :  { %2021 = vsyncadd [#allocation18], 4294967040 }
 0x66e   :  { %1248 = vsyncpa [#allocation3], 1 }
 0x66f   :  { %1249 = vsyncpa [#allocation6], 1 }
 0x670   :  { %1250 = vsyncpa [#allocation9], 1 }
 0x671   :  { %1251 = vsyncpa [#allocation12], 1 }
 0x672   :  { %1252 = vsyncpa [#allocation15], 1 }
 0x673   :  { %1253 = vsyncpa [#allocation4], 1 }
 0x674   :  { %1254 = vsyncpa [#allocation18], 1 }

</bundles_post_ra>
